<compile_context>
chip_gen: v6e
topology: v6e:2x2x1
jax: 0.10.0
libtpu: 0.0.40
codegen_flags: <defaults>
</compile_context>

<pallas_src>
import jax
import jax.numpy as jnp
from jax.experimental import pallas as pl
from jax.experimental.pallas import tpu as pltpu

# Small synthetic CLIP-text config (lane-dense model dims).
B, S, D, H, E, VOCAB, LAYERS = 2, 8, 128, 4, 128, 64, 2
HD = D // H
EPS = 1e-5


def _ln(x, g, b):
    mu = jnp.mean(x, axis=-1, keepdims=True)
    var = jnp.mean((x - mu) ** 2, axis=-1, keepdims=True)
    return (x - mu) * jax.lax.rsqrt(var + EPS) * g + b


def clip_text_kernel(x0_ref, eot_ref, lnfg_ref, lnfb_ref, wproj_ref,
                     ln1g_ref, ln1b_ref, wqkv_ref, bqkv_ref, wo_ref, bo_ref,
                     ln2g_ref, ln2b_ref, wfc_ref, bfc_ref, wpr_ref, bpr_ref,
                     o_ref, x_scr):
    """Fused CLIP text transformer: one grid step == one residual block.

    Step 0 loads the embedded tokens into the resident VMEM scratch; the last
    step additionally applies ln_final + EOT gather + text_projection.
    """
    layer = pl.program_id(0)
    n_layers = pl.num_programs(0)

    @pl.when(layer == 0)
    def _init():
        x_scr[...] = x0_ref[...]
        o_ref[...] = jnp.zeros_like(o_ref)

    x = x_scr[...]                                           # (B, S, D) f32

    # ---------------- attention branch ----------------
    xn = _ln(x, ln1g_ref[...], ln1b_ref[...])
    qkv = jnp.einsum('bsd,de->bse', xn.astype(jnp.bfloat16), wqkv_ref[...],
                     preferred_element_type=jnp.float32) + bqkv_ref[...]

    # causal mask built in-kernel (VPU iota compare, no HBM mask tensor)
    rows = jax.lax.broadcasted_iota(jnp.int32, (B, S, S), 1)
    cols = jax.lax.broadcasted_iota(jnp.int32, (B, S, S), 2)
    causal = cols <= rows

    wo = wo_ref[...]                                         # (D, D) bf16
    attn = jnp.zeros((B, S, D), jnp.float32)
    for h in range(H):                                       # short static loop
        # 1/sqrt(HD) already folded into the Q columns of w_qkv at init time.
        qh = qkv[:, :, h * HD:(h + 1) * HD]
        kh = qkv[:, :, D + h * HD:D + (h + 1) * HD]
        vh = qkv[:, :, 2 * D + h * HD:2 * D + (h + 1) * HD]
        s = jnp.einsum('bqd,bkd->bqk',
                       qh.astype(jnp.bfloat16), kh.astype(jnp.bfloat16),
                       preferred_element_type=jnp.float32)   # (B, S, S)
        s = jnp.where(causal, s, jnp.float32(-1e9))
        s = s - jnp.max(s, axis=-1, keepdims=True)
        p = jnp.exp(s)
        p = p * pl.reciprocal(jnp.sum(p, axis=-1, keepdims=True), approx=True)
        ctx = jnp.einsum('bqk,bkd->bqd',
                         p.astype(jnp.bfloat16), vh.astype(jnp.bfloat16),
                         preferred_element_type=jnp.float32)  # (B, S, HD)
        # per-head row-slice of the output projection (full 128-lane output)
        attn = attn + jnp.einsum('bqd,de->bqe',
                                 ctx.astype(jnp.bfloat16),
                                 wo[h * HD:(h + 1) * HD, :],
                                 preferred_element_type=jnp.float32)

    x = x + attn + bo_ref[...]                               # residual + bias

    # ---------------- MLP branch ----------------
    xn2 = _ln(x, ln2g_ref[...], ln2b_ref[...])
    hid = jnp.einsum('bsd,de->bse', xn2.astype(jnp.bfloat16), wfc_ref[...],
                     preferred_element_type=jnp.float32) + bfc_ref[...]
    hid = hid * jax.nn.sigmoid(1.702 * hid)                  # QuickGELU (f32)
    mlp = jnp.einsum('bse,ed->bsd', hid.astype(jnp.bfloat16), wpr_ref[...],
                     preferred_element_type=jnp.float32) + bpr_ref[...]

    x = x + mlp
    x_scr[...] = x

    # ---------------- final step: ln_final + EOT gather + projection --------
    @pl.when(layer == n_layers - 1)
    def _finalize():
        # EOT gather via one-hot mask: sum_s onehot[b,s] * x[b,s,:]
        x_eot = jnp.sum(eot_ref[...] * x, axis=1)            # (B, D)
        xnf = _ln(x_eot, lnfg_ref[...], lnfb_ref[...])
        o_ref[...] = jnp.dot(xnf.astype(jnp.bfloat16), wproj_ref[...],
                             preferred_element_type=jnp.float32)  # (B, E)


def encode_text_pallas(x0, eot_onehot, params):
    const_args = (x0, eot_onehot,
                  params['ln_final_g'], params['ln_final_b'],
                  params['text_projection'])
    layer_args = (params['ln1_g'], params['ln1_b'],
                  params['w_qkv'], params['b_qkv'],
                  params['w_o'], params['b_o'],
                  params['ln2_g'], params['ln2_b'],
                  params['w_fc'], params['b_fc'],
                  params['w_pr'], params['b_pr'])

    def const_spec(a):
        nd = a.ndim
        return pl.BlockSpec(a.shape, lambda l, nd=nd: (0,) * nd)

    def layer_spec(a):
        nd = a.ndim - 1
        return pl.BlockSpec((None,) + a.shape[1:],
                            lambda l, nd=nd: (l,) + (0,) * nd)

    grid_spec = pltpu.PrefetchScalarGridSpec(
        num_scalar_prefetch=0,
        grid=(LAYERS,),
        in_specs=([const_spec(a) for a in const_args]
                  + [layer_spec(a) for a in layer_args]),
        out_specs=pl.BlockSpec((B, E), lambda l: (0, 0)),
        scratch_shapes=[pltpu.VMEM((B, S, D), jnp.float32)],
    )
    return pl.pallas_call(
        clip_text_kernel,
        out_shape=jax.ShapeDtypeStruct((B, E), jnp.float32),
        grid_spec=grid_spec,
        compiler_params=pltpu.CompilerParams(
            dimension_semantics=("arbitrary",)),
    )(*const_args, *layer_args)


def init_params(key):
    ks = iter(jax.random.split(key, 8))
    nrm = lambda shape, scale=0.02: (
        jax.random.normal(next(ks), shape, jnp.float32) * scale)

    # Fold the 1/sqrt(HD) attention scale into the Q columns of w_qkv / b_qkv.
    scale = HD ** -0.5
    w_qkv = nrm((LAYERS, D, 3 * D))
    w_qkv = w_qkv.at[:, :, :D].multiply(scale)
    b_qkv = jnp.zeros((LAYERS, 1, 3 * D), jnp.float32)
    b_qkv = b_qkv.at[:, :, :D].multiply(scale)               # no-op (zeros), kept for generality

    return {
        'token_embedding': nrm((VOCAB, D)),
        'positional_embedding': nrm((S, D), 0.01),
        'ln_final_g': jnp.ones((1, D), jnp.float32),
        'ln_final_b': jnp.zeros((1, D), jnp.float32),
        'text_projection': nrm((D, E), D ** -0.5).astype(jnp.bfloat16),
        # stacked per-layer params (leading layer axis, picked by index_map)
        'ln1_g': jnp.ones((LAYERS, 1, D), jnp.float32),
        'ln1_b': jnp.zeros((LAYERS, 1, D), jnp.float32),
        'w_qkv': w_qkv.astype(jnp.bfloat16),
        'b_qkv': b_qkv,
        'w_o': nrm((LAYERS, D, D)).astype(jnp.bfloat16),
        'b_o': jnp.zeros((LAYERS, 1, D), jnp.float32),
        'ln2_g': jnp.ones((LAYERS, 1, D), jnp.float32),
        'ln2_b': jnp.zeros((LAYERS, 1, D), jnp.float32),
        'w_fc': nrm((LAYERS, D, 4 * D)).astype(jnp.bfloat16),
        'b_fc': jnp.zeros((LAYERS, 1, 4 * D), jnp.float32),
        'w_pr': nrm((LAYERS, 4 * D, D)).astype(jnp.bfloat16),
        'b_pr': jnp.zeros((LAYERS, 1, D), jnp.float32),
    }


@jax.jit
def text_clip_forward(text, params):
    # glue: embedding gather + positional add (no clean Pallas equivalent for
    # the int gather; done in plain JAX)
    x = jnp.take(params['token_embedding'], text, axis=0)    # (B, S, D)
    x = x + params['positional_embedding'][None, :, :]

    # glue: EOT token index = argmax of token ids (CLIP convention), passed to
    # the kernel as a one-hot selector so the gather fuses into the last step.
    eot = jnp.argmax(text, axis=-1)                          # (B,)
    eot_onehot = jax.nn.one_hot(eot, S, dtype=jnp.float32)[:, :, None]  # (B, S, 1)

    return encode_text_pallas(x, eot_onehot, params)         # (B, E)


if __name__ == "__main__":
    key = jax.random.PRNGKey(0)
    k_par, k_tok = jax.random.split(key)
    params = init_params(k_par)

    text = jax.random.randint(k_tok, (B, S), 1, VOCAB - 1, dtype=jnp.int32)
    text = text.at[:, -1].set(VOCAB - 1)                     # EOT token has max id

    feats = text_clip_forward(text, params)
    jax.block_until_ready(feats)
    assert feats.shape == (B, E) and feats.dtype == jnp.float32
    print("KERNEL_OK")
</pallas_src>

<mosaic_0001>
module attributes {stable_mosaic.version = 11 : i64} {
  func.func @clip_text_kernel(%arg0: i32, %arg1: memref<2x8x128xf32, #tpu.memory_space<vmem>>, %arg2: memref<2x8x1xf32, #tpu.memory_space<vmem>>, %arg3: memref<1x128xf32, #tpu.memory_space<vmem>>, %arg4: memref<1x128xf32, #tpu.memory_space<vmem>>, %arg5: memref<128x128xbf16, #tpu.memory_space<vmem>>, %arg6: memref<1x1x128xf32, #tpu.memory_space<vmem>>, %arg7: memref<1x1x128xf32, #tpu.memory_space<vmem>>, %arg8: memref<1x128x384xbf16, #tpu.memory_space<vmem>>, %arg9: memref<1x1x384xf32, #tpu.memory_space<vmem>>, %arg10: memref<1x128x128xbf16, #tpu.memory_space<vmem>>, %arg11: memref<1x1x128xf32, #tpu.memory_space<vmem>>, %arg12: memref<1x1x128xf32, #tpu.memory_space<vmem>>, %arg13: memref<1x1x128xf32, #tpu.memory_space<vmem>>, %arg14: memref<1x128x512xbf16, #tpu.memory_space<vmem>>, %arg15: memref<1x1x512xf32, #tpu.memory_space<vmem>>, %arg16: memref<1x512x128xbf16, #tpu.memory_space<vmem>>, %arg17: memref<1x1x128xf32, #tpu.memory_space<vmem>>, %arg18: memref<2x128xf32, #tpu.memory_space<vmem>>, %arg19: memref<2x8x128xf32, #tpu.memory_space<vmem>>) attributes {dimension_semantics = [#tpu.dimension_semantics<arbitrary>], iteration_bounds = array<i64: 2>, scalar_prefetch = 0 : i64, scratch_operands = 1 : i64, tpu.core_type = #tpu.core_type<tc>, window_params = [{pipeline_mode = #tpu.pipeline_mode<synchronous>, transform_indices = @transform_0, window_bounds = array<i64: 2, 8, 128>}, {pipeline_mode = #tpu.pipeline_mode<synchronous>, transform_indices = @transform_1, window_bounds = array<i64: 2, 8, 1>}, {pipeline_mode = #tpu.pipeline_mode<synchronous>, transform_indices = @transform_2, window_bounds = array<i64: 1, 128>}, {pipeline_mode = #tpu.pipeline_mode<synchronous>, transform_indices = @transform_3, window_bounds = array<i64: 1, 128>}, {pipeline_mode = #tpu.pipeline_mode<synchronous>, transform_indices = @transform_4, window_bounds = array<i64: 128, 128>}, {transform_indices = @transform_5, window_bounds = array<i64: 1, 1, 128>}, {transform_indices = @transform_6, window_bounds = array<i64: 1, 1, 128>}, {transform_indices = @transform_7, window_bounds = array<i64: 1, 128, 384>}, {transform_indices = @transform_8, window_bounds = array<i64: 1, 1, 384>}, {transform_indices = @transform_9, window_bounds = array<i64: 1, 128, 128>}, {transform_indices = @transform_10, window_bounds = array<i64: 1, 1, 128>}, {transform_indices = @transform_11, window_bounds = array<i64: 1, 1, 128>}, {transform_indices = @transform_12, window_bounds = array<i64: 1, 1, 128>}, {transform_indices = @transform_13, window_bounds = array<i64: 1, 128, 512>}, {transform_indices = @transform_14, window_bounds = array<i64: 1, 1, 512>}, {transform_indices = @transform_15, window_bounds = array<i64: 1, 512, 128>}, {transform_indices = @transform_16, window_bounds = array<i64: 1, 1, 128>}, {pipeline_mode = #tpu.pipeline_mode<synchronous>, transform_indices = @transform_17, window_bounds = array<i64: 2, 128>}]} {
    %c0_i32 = arith.constant 0 : i32
    %0 = arith.cmpi eq, %arg0, %c0_i32 : i32
    %1 = arith.extui %0 : i1 to i32
    %c0_i32_0 = arith.constant 0 : i32
    %2 = arith.cmpi ne, %1, %c0_i32_0 : i32
    scf.if %2 {
      %c0_82 = arith.constant 0 : index
      %c0_83 = arith.constant 0 : index
      %c0_84 = arith.constant 0 : index
      %212 = vector.load %arg1[%c0_82, %c0_83, %c0_84] : memref<2x8x128xf32, #tpu.memory_space<vmem>>, vector<2x8x128xf32>
      %c0_85 = arith.constant 0 : index
      %c0_86 = arith.constant 0 : index
      %c0_87 = arith.constant 0 : index
      %213 = vector.load %arg19[%c0_85, %c0_86, %c0_87] : memref<2x8x128xf32, #tpu.memory_space<vmem>>, vector<2x8x128xf32>
      tpu.vector_store %arg19[%c0_85, %c0_86, %c0_87], %212 {strides = array<i32>} : memref<2x8x128xf32, #tpu.memory_space<vmem>>, vector<2x8x128xf32>,
      %cst_88 = arith.constant 0.000000e+00 : f32
      %214 = vector.broadcast %cst_88 : f32 to vector<2x128xf32>
      %c0_89 = arith.constant 0 : index
      %c0_90 = arith.constant 0 : index
      %215 = vector.load %arg18[%c0_89, %c0_90] : memref<2x128xf32, #tpu.memory_space<vmem>>, vector<2x128xf32>
      tpu.vector_store %arg18[%c0_89, %c0_90], %214 {strides = array<i32>} : memref<2x128xf32, #tpu.memory_space<vmem>>, vector<2x128xf32>,
    } else {
    }
    %c0 = arith.constant 0 : index
    %c0_1 = arith.constant 0 : index
    %c0_2 = arith.constant 0 : index
    %3 = vector.load %arg19[%c0, %c0_1, %c0_2] : memref<2x8x128xf32, #tpu.memory_space<vmem>>, vector<2x8x128xf32>
    %c0_3 = arith.constant 0 : index
    %c0_4 = arith.constant 0 : index
    %c0_5 = arith.constant 0 : index
    %4 = vector.load %arg6[%c0_3, %c0_4, %c0_5] : memref<1x1x128xf32, #tpu.memory_space<vmem>>, vector<1x1x128xf32>
    %5 = vector.shape_cast %4 : vector<1x1x128xf32> to vector<1x128xf32>
    %c0_6 = arith.constant 0 : index
    %c0_7 = arith.constant 0 : index
    %c0_8 = arith.constant 0 : index
    %6 = vector.load %arg7[%c0_6, %c0_7, %c0_8] : memref<1x1x128xf32, #tpu.memory_space<vmem>>, vector<1x1x128xf32>
    %7 = vector.shape_cast %6 : vector<1x1x128xf32> to vector<1x128xf32>
    %cst = arith.constant dense<0.000000e+00> : vector<2x8xf32>
    %8 = vector.multi_reduction <add>, %3, %cst [2] : vector<2x8x128xf32> to vector<2x8xf32>
    %9 = vector.shape_cast %8 : vector<2x8xf32> to vector<2x8x1xf32>
    %cst_9 = arith.constant 1.280000e+02 : f32
    %10 = vector.broadcast %cst_9 : f32 to vector<2x8x1xf32>
    %11 = arith.divf %9, %10 : vector<2x8x1xf32>
    %12 = vector.broadcast %11 : vector<2x8x1xf32> to vector<2x8x128xf32>
    %13 = arith.subf %3, %12 : vector<2x8x128xf32>
    %14 = arith.mulf %13, %13 : vector<2x8x128xf32>
    %cst_10 = arith.constant dense<0.000000e+00> : vector<2x8xf32>
    %15 = vector.multi_reduction <add>, %14, %cst_10 [2] : vector<2x8x128xf32> to vector<2x8xf32>
    %16 = vector.shape_cast %15 : vector<2x8xf32> to vector<2x8x1xf32>
    %cst_11 = arith.constant 1.280000e+02 : f32
    %17 = vector.broadcast %cst_11 : f32 to vector<2x8x1xf32>
    %18 = arith.divf %16, %17 : vector<2x8x1xf32>
    %19 = vector.broadcast %11 : vector<2x8x1xf32> to vector<2x8x128xf32>
    %20 = arith.subf %3, %19 : vector<2x8x128xf32>
    %cst_12 = arith.constant 9.99999974E-6 : f32
    %21 = vector.broadcast %cst_12 : f32 to vector<2x8x1xf32>
    %22 = arith.addf %18, %21 : vector<2x8x1xf32>
    %23 = math.rsqrt %22 : vector<2x8x1xf32>
    %24 = vector.broadcast %23 : vector<2x8x1xf32> to vector<2x8x128xf32>
    %25 = arith.mulf %20, %24 : vector<2x8x128xf32>
    %26 = vector.shape_cast %5 : vector<1x128xf32> to vector<1x1x128xf32>
    %27 = vector.broadcast %26 : vector<1x1x128xf32> to vector<2x8x128xf32>
    %28 = arith.mulf %25, %27 : vector<2x8x128xf32>
    %29 = vector.shape_cast %7 : vector<1x128xf32> to vector<1x1x128xf32>
    %30 = vector.broadcast %29 : vector<1x1x128xf32> to vector<2x8x128xf32>
    %31 = arith.addf %28, %30 : vector<2x8x128xf32>
    %32 = arith.truncf %31 : vector<2x8x128xf32> to vector<2x8x128xbf16>
    %c0_13 = arith.constant 0 : index
    %c0_14 = arith.constant 0 : index
    %c0_15 = arith.constant 0 : index
    %33 = vector.load %arg8[%c0_13, %c0_14, %c0_15] : memref<1x128x384xbf16, #tpu.memory_space<vmem>>, vector<1x128x384xbf16>
    %34 = vector.shape_cast %33 : vector<1x128x384xbf16> to vector<128x384xbf16>
    "tpu.trace_start"() <{level = 10 : i32, message = "bsd,de->bse"}> : () -> ()
    %cst_16 = arith.constant dense<0.000000e+00> : vector<2x8x384xf32>
    %35 = tpu.matmul %32, %34, %cst_16 {dimension_numbers = #tpu.dot_dimension_numbers<[2], [0], [0, 1], [1], [0, 0, 0, 1, 1, 1], [], []>} : vector<2x8x128xbf16>, vector<128x384xbf16>, vector<2x8x384xf32> -> vector<2x8x384xf32>
    "tpu.trace_stop"() : () -> ()
    %c0_17 = arith.constant 0 : index
    %c0_18 = arith.constant 0 : index
    %c0_19 = arith.constant 0 : index
    %36 = vector.load %arg9[%c0_17, %c0_18, %c0_19] : memref<1x1x384xf32, #tpu.memory_space<vmem>>, vector<1x1x384xf32>
    %37 = vector.shape_cast %36 : vector<1x1x384xf32> to vector<1x384xf32>
    %38 = vector.shape_cast %37 : vector<1x384xf32> to vector<1x1x384xf32>
    %39 = vector.broadcast %38 : vector<1x1x384xf32> to vector<2x8x384xf32>
    %40 = arith.addf %35, %39 : vector<2x8x384xf32>
    %41 = tpu.iota {dimensions = array<i32: 1>} : vector<2x8x8xi32>
    %42 = tpu.iota {dimensions = array<i32: 2>} : vector<2x8x8xi32>
    %43 = arith.cmpi sle, %42, %41 : vector<2x8x8xi32>
    %c0_20 = arith.constant 0 : index
    %c0_21 = arith.constant 0 : index
    %c0_22 = arith.constant 0 : index
    %44 = vector.load %arg10[%c0_20, %c0_21, %c0_22] : memref<1x128x128xbf16, #tpu.memory_space<vmem>>, vector<1x128x128xbf16>
    %45 = vector.shape_cast %44 : vector<1x128x128xbf16> to vector<128x128xbf16>
    %cst_23 = arith.constant 0.000000e+00 : f32
    %46 = vector.broadcast %cst_23 : f32 to vector<2x8x128xf32>
    %47 = vector.extract_strided_slice %40 {offsets = [0, 0, 0], sizes = [2, 8, 32], strides = [1, 1, 1]} : vector<2x8x384xf32> to vector<2x8x32xf32>
    %48 = vector.extract_strided_slice %40 {offsets = [0, 0, 128], sizes = [2, 8, 32], strides = [1, 1, 1]} : vector<2x8x384xf32> to vector<2x8x32xf32>
    %49 = vector.extract_strided_slice %40 {offsets = [0, 0, 256], sizes = [2, 8, 32], strides = [1, 1, 1]} : vector<2x8x384xf32> to vector<2x8x32xf32>
    %50 = arith.truncf %47 : vector<2x8x32xf32> to vector<2x8x32xbf16>
    %51 = arith.truncf %48 : vector<2x8x32xf32> to vector<2x8x32xbf16>
    "tpu.trace_start"() <{level = 10 : i32, message = "bqd,bkd->bqk"}> : () -> ()
    %cst_24 = arith.constant dense<0.000000e+00> : vector<2x8x8xf32>
    %52 = tpu.matmul %50, %51, %cst_24 {dimension_numbers = #tpu.dot_dimension_numbers<[2], [2], [1], [1], [0, 0, 0, 1, 1, 1], [0], [0]>} : vector<2x8x32xbf16>, vector<2x8x32xbf16>, vector<2x8x8xf32> -> vector<2x8x8xf32>
    %cst_25 = arith.constant -1.000000e+09 : f32
    "tpu.trace_stop"() : () -> ()
    %53 = vector.broadcast %cst_25 : f32 to vector<2x8x8xf32>
    %54 = arith.select %43, %52, %53 : vector<2x8x8xi1>, vector<2x8x8xf32>
    %cst_26 = arith.constant dense<0xFF800000> : vector<2x8xf32>
    %55 = vector.multi_reduction <maximumf>, %54, %cst_26 [2] : vector<2x8x8xf32> to vector<2x8xf32>
    %56 = vector.shape_cast %55 : vector<2x8xf32> to vector<2x8x1xf32>
    %57 = vector.broadcast %56 : vector<2x8x1xf32> to vector<2x8x8xf32>
    %58 = arith.subf %54, %57 : vector<2x8x8xf32>
    %59 = math.exp %58 : vector<2x8x8xf32>
    %cst_27 = arith.constant dense<0.000000e+00> : vector<2x8xf32>
    %60 = vector.multi_reduction <add>, %59, %cst_27 [2] : vector<2x8x8xf32> to vector<2x8xf32>
    %61 = vector.shape_cast %60 : vector<2x8xf32> to vector<2x8x1xf32>
    %62 = tpu.reciprocal %61 {approx = true} : vector<2x8x1xf32> -> vector<2x8x1xf32>
    %63 = vector.broadcast %62 : vector<2x8x1xf32> to vector<2x8x8xf32>
    %64 = arith.mulf %59, %63 : vector<2x8x8xf32>
    %65 = arith.truncf %64 : vector<2x8x8xf32> to vector<2x8x8xbf16>
    %66 = arith.truncf %49 : vector<2x8x32xf32> to vector<2x8x32xbf16>
    "tpu.trace_start"() <{level = 10 : i32, message = "bqk,bkd->bqd"}> : () -> ()
    %cst_28 = arith.constant dense<0.000000e+00> : vector<2x8x32xf32>
    %67 = tpu.matmul %65, %66, %cst_28 {dimension_numbers = #tpu.dot_dimension_numbers<[2], [1], [1], [2], [0, 0, 0, 1, 1, 2], [0], [0]>} : vector<2x8x8xbf16>, vector<2x8x32xbf16>, vector<2x8x32xf32> -> vector<2x8x32xf32>
    "tpu.trace_stop"() : () -> ()
    %68 = arith.truncf %67 : vector<2x8x32xf32> to vector<2x8x32xbf16>
    %69 = vector.extract_strided_slice %45 {offsets = [0, 0], sizes = [32, 128], strides = [1, 1]} : vector<128x128xbf16> to vector<32x128xbf16>
    "tpu.trace_start"() <{level = 10 : i32, message = "bqd,de->bqe"}> : () -> ()
    %cst_29 = arith.constant dense<0.000000e+00> : vector<2x8x128xf32>
    %70 = tpu.matmul %68, %69, %cst_29 {dimension_numbers = #tpu.dot_dimension_numbers<[2], [0], [0, 1], [1], [0, 0, 0, 1, 1, 1], [], []>} : vector<2x8x32xbf16>, vector<32x128xbf16>, vector<2x8x128xf32> -> vector<2x8x128xf32>
    "tpu.trace_stop"() : () -> ()
    %71 = arith.addf %46, %70 : vector<2x8x128xf32>
    %72 = vector.extract_strided_slice %40 {offsets = [0, 0, 32], sizes = [2, 8, 32], strides = [1, 1, 1]} : vector<2x8x384xf32> to vector<2x8x32xf32>
    %73 = vector.extract_strided_slice %40 {offsets = [0, 0, 160], sizes = [2, 8, 32], strides = [1, 1, 1]} : vector<2x8x384xf32> to vector<2x8x32xf32>
    %74 = vector.extract_strided_slice %40 {offsets = [0, 0, 288], sizes = [2, 8, 32], strides = [1, 1, 1]} : vector<2x8x384xf32> to vector<2x8x32xf32>
    %75 = arith.truncf %72 : vector<2x8x32xf32> to vector<2x8x32xbf16>
    %76 = arith.truncf %73 : vector<2x8x32xf32> to vector<2x8x32xbf16>
    "tpu.trace_start"() <{level = 10 : i32, message = "bqd,bkd->bqk"}> : () -> ()
    %cst_30 = arith.constant dense<0.000000e+00> : vector<2x8x8xf32>
    %77 = tpu.matmul %75, %76, %cst_30 {dimension_numbers = #tpu.dot_dimension_numbers<[2], [2], [1], [1], [0, 0, 0, 1, 1, 1], [0], [0]>} : vector<2x8x32xbf16>, vector<2x8x32xbf16>, vector<2x8x8xf32> -> vector<2x8x8xf32>
    %cst_31 = arith.constant -1.000000e+09 : f32
    "tpu.trace_stop"() : () -> ()
    %78 = vector.broadcast %cst_31 : f32 to vector<2x8x8xf32>
    %79 = arith.select %43, %77, %78 : vector<2x8x8xi1>, vector<2x8x8xf32>
    %cst_32 = arith.constant dense<0xFF800000> : vector<2x8xf32>
    %80 = vector.multi_reduction <maximumf>, %79, %cst_32 [2] : vector<2x8x8xf32> to vector<2x8xf32>
    %81 = vector.shape_cast %80 : vector<2x8xf32> to vector<2x8x1xf32>
    %82 = vector.broadcast %81 : vector<2x8x1xf32> to vector<2x8x8xf32>
    %83 = arith.subf %79, %82 : vector<2x8x8xf32>
    %84 = math.exp %83 : vector<2x8x8xf32>
    %cst_33 = arith.constant dense<0.000000e+00> : vector<2x8xf32>
    %85 = vector.multi_reduction <add>, %84, %cst_33 [2] : vector<2x8x8xf32> to vector<2x8xf32>
    %86 = vector.shape_cast %85 : vector<2x8xf32> to vector<2x8x1xf32>
    %87 = tpu.reciprocal %86 {approx = true} : vector<2x8x1xf32> -> vector<2x8x1xf32>
    %88 = vector.broadcast %87 : vector<2x8x1xf32> to vector<2x8x8xf32>
    %89 = arith.mulf %84, %88 : vector<2x8x8xf32>
    %90 = arith.truncf %89 : vector<2x8x8xf32> to vector<2x8x8xbf16>
    %91 = arith.truncf %74 : vector<2x8x32xf32> to vector<2x8x32xbf16>
    "tpu.trace_start"() <{level = 10 : i32, message = "bqk,bkd->bqd"}> : () -> ()
    %cst_34 = arith.constant dense<0.000000e+00> : vector<2x8x32xf32>
    %92 = tpu.matmul %90, %91, %cst_34 {dimension_numbers = #tpu.dot_dimension_numbers<[2], [1], [1], [2], [0, 0, 0, 1, 1, 2], [0], [0]>} : vector<2x8x8xbf16>, vector<2x8x32xbf16>, vector<2x8x32xf32> -> vector<2x8x32xf32>
    "tpu.trace_stop"() : () -> ()
    %93 = arith.truncf %92 : vector<2x8x32xf32> to vector<2x8x32xbf16>
    %94 = vector.extract_strided_slice %45 {offsets = [32, 0], sizes = [32, 128], strides = [1, 1]} : vector<128x128xbf16> to vector<32x128xbf16>
    "tpu.trace_start"() <{level = 10 : i32, message = "bqd,de->bqe"}> : () -> ()
    %cst_35 = arith.constant dense<0.000000e+00> : vector<2x8x128xf32>
    %95 = tpu.matmul %93, %94, %cst_35 {dimension_numbers = #tpu.dot_dimension_numbers<[2], [0], [0, 1], [1], [0, 0, 0, 1, 1, 1], [], []>} : vector<2x8x32xbf16>, vector<32x128xbf16>, vector<2x8x128xf32> -> vector<2x8x128xf32>
    "tpu.trace_stop"() : () -> ()
    %96 = arith.addf %71, %95 : vector<2x8x128xf32>
    %97 = vector.extract_strided_slice %40 {offsets = [0, 0, 64], sizes = [2, 8, 32], strides = [1, 1, 1]} : vector<2x8x384xf32> to vector<2x8x32xf32>
    %98 = vector.extract_strided_slice %40 {offsets = [0, 0, 192], sizes = [2, 8, 32], strides = [1, 1, 1]} : vector<2x8x384xf32> to vector<2x8x32xf32>
    %99 = vector.extract_strided_slice %40 {offsets = [0, 0, 320], sizes = [2, 8, 32], strides = [1, 1, 1]} : vector<2x8x384xf32> to vector<2x8x32xf32>
    %100 = arith.truncf %97 : vector<2x8x32xf32> to vector<2x8x32xbf16>
    %101 = arith.truncf %98 : vector<2x8x32xf32> to vector<2x8x32xbf16>
    "tpu.trace_start"() <{level = 10 : i32, message = "bqd,bkd->bqk"}> : () -> ()
    %cst_36 = arith.constant dense<0.000000e+00> : vector<2x8x8xf32>
    %102 = tpu.matmul %100, %101, %cst_36 {dimension_numbers = #tpu.dot_dimension_numbers<[2], [2], [1], [1], [0, 0, 0, 1, 1, 1], [0], [0]>} : vector<2x8x32xbf16>, vector<2x8x32xbf16>, vector<2x8x8xf32> -> vector<2x8x8xf32>
    %cst_37 = arith.constant -1.000000e+09 : f32
    "tpu.trace_stop"() : () -> ()
    %103 = vector.broadcast %cst_37 : f32 to vector<2x8x8xf32>
    %104 = arith.select %43, %102, %103 : vector<2x8x8xi1>, vector<2x8x8xf32>
    %cst_38 = arith.constant dense<0xFF800000> : vector<2x8xf32>
    %105 = vector.multi_reduction <maximumf>, %104, %cst_38 [2] : vector<2x8x8xf32> to vector<2x8xf32>
    %106 = vector.shape_cast %105 : vector<2x8xf32> to vector<2x8x1xf32>
    %107 = vector.broadcast %106 : vector<2x8x1xf32> to vector<2x8x8xf32>
    %108 = arith.subf %104, %107 : vector<2x8x8xf32>
    %109 = math.exp %108 : vector<2x8x8xf32>
    %cst_39 = arith.constant dense<0.000000e+00> : vector<2x8xf32>
    %110 = vector.multi_reduction <add>, %109, %cst_39 [2] : vector<2x8x8xf32> to vector<2x8xf32>
    %111 = vector.shape_cast %110 : vector<2x8xf32> to vector<2x8x1xf32>
    %112 = tpu.reciprocal %111 {approx = true} : vector<2x8x1xf32> -> vector<2x8x1xf32>
    %113 = vector.broadcast %112 : vector<2x8x1xf32> to vector<2x8x8xf32>
    %114 = arith.mulf %109, %113 : vector<2x8x8xf32>
    %115 = arith.truncf %114 : vector<2x8x8xf32> to vector<2x8x8xbf16>
    %116 = arith.truncf %99 : vector<2x8x32xf32> to vector<2x8x32xbf16>
    "tpu.trace_start"() <{level = 10 : i32, message = "bqk,bkd->bqd"}> : () -> ()
    %cst_40 = arith.constant dense<0.000000e+00> : vector<2x8x32xf32>
    %117 = tpu.matmul %115, %116, %cst_40 {dimension_numbers = #tpu.dot_dimension_numbers<[2], [1], [1], [2], [0, 0, 0, 1, 1, 2], [0], [0]>} : vector<2x8x8xbf16>, vector<2x8x32xbf16>, vector<2x8x32xf32> -> vector<2x8x32xf32>
    "tpu.trace_stop"() : () -> ()
    %118 = arith.truncf %117 : vector<2x8x32xf32> to vector<2x8x32xbf16>
    %119 = vector.extract_strided_slice %45 {offsets = [64, 0], sizes = [32, 128], strides = [1, 1]} : vector<128x128xbf16> to vector<32x128xbf16>
    "tpu.trace_start"() <{level = 10 : i32, message = "bqd,de->bqe"}> : () -> ()
    %cst_41 = arith.constant dense<0.000000e+00> : vector<2x8x128xf32>
    %120 = tpu.matmul %118, %119, %cst_41 {dimension_numbers = #tpu.dot_dimension_numbers<[2], [0], [0, 1], [1], [0, 0, 0, 1, 1, 1], [], []>} : vector<2x8x32xbf16>, vector<32x128xbf16>, vector<2x8x128xf32> -> vector<2x8x128xf32>
    "tpu.trace_stop"() : () -> ()
    %121 = arith.addf %96, %120 : vector<2x8x128xf32>
    %122 = vector.extract_strided_slice %40 {offsets = [0, 0, 96], sizes = [2, 8, 32], strides = [1, 1, 1]} : vector<2x8x384xf32> to vector<2x8x32xf32>
    %123 = vector.extract_strided_slice %40 {offsets = [0, 0, 224], sizes = [2, 8, 32], strides = [1, 1, 1]} : vector<2x8x384xf32> to vector<2x8x32xf32>
    %124 = vector.extract_strided_slice %40 {offsets = [0, 0, 352], sizes = [2, 8, 32], strides = [1, 1, 1]} : vector<2x8x384xf32> to vector<2x8x32xf32>
    %125 = arith.truncf %122 : vector<2x8x32xf32> to vector<2x8x32xbf16>
    %126 = arith.truncf %123 : vector<2x8x32xf32> to vector<2x8x32xbf16>
    "tpu.trace_start"() <{level = 10 : i32, message = "bqd,bkd->bqk"}> : () -> ()
    %cst_42 = arith.constant dense<0.000000e+00> : vector<2x8x8xf32>
    %127 = tpu.matmul %125, %126, %cst_42 {dimension_numbers = #tpu.dot_dimension_numbers<[2], [2], [1], [1], [0, 0, 0, 1, 1, 1], [0], [0]>} : vector<2x8x32xbf16>, vector<2x8x32xbf16>, vector<2x8x8xf32> -> vector<2x8x8xf32>
    %cst_43 = arith.constant -1.000000e+09 : f32
    "tpu.trace_stop"() : () -> ()
    %128 = vector.broadcast %cst_43 : f32 to vector<2x8x8xf32>
    %129 = arith.select %43, %127, %128 : vector<2x8x8xi1>, vector<2x8x8xf32>
    %cst_44 = arith.constant dense<0xFF800000> : vector<2x8xf32>
    %130 = vector.multi_reduction <maximumf>, %129, %cst_44 [2] : vector<2x8x8xf32> to vector<2x8xf32>
    %131 = vector.shape_cast %130 : vector<2x8xf32> to vector<2x8x1xf32>
    %132 = vector.broadcast %131 : vector<2x8x1xf32> to vector<2x8x8xf32>
    %133 = arith.subf %129, %132 : vector<2x8x8xf32>
    %134 = math.exp %133 : vector<2x8x8xf32>
    %cst_45 = arith.constant dense<0.000000e+00> : vector<2x8xf32>
    %135 = vector.multi_reduction <add>, %134, %cst_45 [2] : vector<2x8x8xf32> to vector<2x8xf32>
    %136 = vector.shape_cast %135 : vector<2x8xf32> to vector<2x8x1xf32>
    %137 = tpu.reciprocal %136 {approx = true} : vector<2x8x1xf32> -> vector<2x8x1xf32>
    %138 = vector.broadcast %137 : vector<2x8x1xf32> to vector<2x8x8xf32>
    %139 = arith.mulf %134, %138 : vector<2x8x8xf32>
    %140 = arith.truncf %139 : vector<2x8x8xf32> to vector<2x8x8xbf16>
    %141 = arith.truncf %124 : vector<2x8x32xf32> to vector<2x8x32xbf16>
    "tpu.trace_start"() <{level = 10 : i32, message = "bqk,bkd->bqd"}> : () -> ()
    %cst_46 = arith.constant dense<0.000000e+00> : vector<2x8x32xf32>
    %142 = tpu.matmul %140, %141, %cst_46 {dimension_numbers = #tpu.dot_dimension_numbers<[2], [1], [1], [2], [0, 0, 0, 1, 1, 2], [0], [0]>} : vector<2x8x8xbf16>, vector<2x8x32xbf16>, vector<2x8x32xf32> -> vector<2x8x32xf32>
    "tpu.trace_stop"() : () -> ()
    %143 = arith.truncf %142 : vector<2x8x32xf32> to vector<2x8x32xbf16>
    %144 = vector.extract_strided_slice %45 {offsets = [96, 0], sizes = [32, 128], strides = [1, 1]} : vector<128x128xbf16> to vector<32x128xbf16>
    "tpu.trace_start"() <{level = 10 : i32, message = "bqd,de->bqe"}> : () -> ()
    %cst_47 = arith.constant dense<0.000000e+00> : vector<2x8x128xf32>
    %145 = tpu.matmul %143, %144, %cst_47 {dimension_numbers = #tpu.dot_dimension_numbers<[2], [0], [0, 1], [1], [0, 0, 0, 1, 1, 1], [], []>} : vector<2x8x32xbf16>, vector<32x128xbf16>, vector<2x8x128xf32> -> vector<2x8x128xf32>
    "tpu.trace_stop"() : () -> ()
    %146 = arith.addf %121, %145 : vector<2x8x128xf32>
    %147 = arith.addf %3, %146 : vector<2x8x128xf32>
    %c0_48 = arith.constant 0 : index
    %c0_49 = arith.constant 0 : index
    %c0_50 = arith.constant 0 : index
    %148 = vector.load %arg11[%c0_48, %c0_49, %c0_50] : memref<1x1x128xf32, #tpu.memory_space<vmem>>, vector<1x1x128xf32>
    %149 = vector.shape_cast %148 : vector<1x1x128xf32> to vector<1x128xf32>
    %150 = vector.shape_cast %149 : vector<1x128xf32> to vector<1x1x128xf32>
    %151 = vector.broadcast %150 : vector<1x1x128xf32> to vector<2x8x128xf32>
    %152 = arith.addf %147, %151 : vector<2x8x128xf32>
    %c0_51 = arith.constant 0 : index
    %c0_52 = arith.constant 0 : index
    %c0_53 = arith.constant 0 : index
    %153 = vector.load %arg12[%c0_51, %c0_52, %c0_53] : memref<1x1x128xf32, #tpu.memory_space<vmem>>, vector<1x1x128xf32>
    %154 = vector.shape_cast %153 : vector<1x1x128xf32> to vector<1x128xf32>
    %c0_54 = arith.constant 0 : index
    %c0_55 = arith.constant 0 : index
    %c0_56 = arith.constant 0 : index
    %155 = vector.load %arg13[%c0_54, %c0_55, %c0_56] : memref<1x1x128xf32, #tpu.memory_space<vmem>>, vector<1x1x128xf32>
    %156 = vector.shape_cast %155 : vector<1x1x128xf32> to vector<1x128xf32>
    %cst_57 = arith.constant dense<0.000000e+00> : vector<2x8xf32>
    %157 = vector.multi_reduction <add>, %152, %cst_57 [2] : vector<2x8x128xf32> to vector<2x8xf32>
    %158 = vector.shape_cast %157 : vector<2x8xf32> to vector<2x8x1xf32>
    %cst_58 = arith.constant 1.280000e+02 : f32
    %159 = vector.broadcast %cst_58 : f32 to vector<2x8x1xf32>
    %160 = arith.divf %158, %159 : vector<2x8x1xf32>
    %161 = vector.broadcast %160 : vector<2x8x1xf32> to vector<2x8x128xf32>
    %162 = arith.subf %152, %161 : vector<2x8x128xf32>
    %163 = arith.mulf %162, %162 : vector<2x8x128xf32>
    %cst_59 = arith.constant dense<0.000000e+00> : vector<2x8xf32>
    %164 = vector.multi_reduction <add>, %163, %cst_59 [2] : vector<2x8x128xf32> to vector<2x8xf32>
    %165 = vector.shape_cast %164 : vector<2x8xf32> to vector<2x8x1xf32>
    %cst_60 = arith.constant 1.280000e+02 : f32
    %166 = vector.broadcast %cst_60 : f32 to vector<2x8x1xf32>
    %167 = arith.divf %165, %166 : vector<2x8x1xf32>
    %168 = vector.broadcast %160 : vector<2x8x1xf32> to vector<2x8x128xf32>
    %169 = arith.subf %152, %168 : vector<2x8x128xf32>
    %cst_61 = arith.constant 9.99999974E-6 : f32
    %170 = vector.broadcast %cst_61 : f32 to vector<2x8x1xf32>
    %171 = arith.addf %167, %170 : vector<2x8x1xf32>
    %172 = math.rsqrt %171 : vector<2x8x1xf32>
    %173 = vector.broadcast %172 : vector<2x8x1xf32> to vector<2x8x128xf32>
    %174 = arith.mulf %169, %173 : vector<2x8x128xf32>
    %175 = vector.shape_cast %154 : vector<1x128xf32> to vector<1x1x128xf32>
    %176 = vector.broadcast %175 : vector<1x1x128xf32> to vector<2x8x128xf32>
    %177 = arith.mulf %174, %176 : vector<2x8x128xf32>
    %178 = vector.shape_cast %156 : vector<1x128xf32> to vector<1x1x128xf32>
    %179 = vector.broadcast %178 : vector<1x1x128xf32> to vector<2x8x128xf32>
    %180 = arith.addf %177, %179 : vector<2x8x128xf32>
    %181 = arith.truncf %180 : vector<2x8x128xf32> to vector<2x8x128xbf16>
    %c0_62 = arith.constant 0 : index
    %c0_63 = arith.constant 0 : index
    %c0_64 = arith.constant 0 : index
    %182 = vector.load %arg14[%c0_62, %c0_63, %c0_64] : memref<1x128x512xbf16, #tpu.memory_space<vmem>>, vector<1x128x512xbf16>
    %183 = vector.shape_cast %182 : vector<1x128x512xbf16> to vector<128x512xbf16>
    "tpu.trace_start"() <{level = 10 : i32, message = "bsd,de->bse"}> : () -> ()
    %cst_65 = arith.constant dense<0.000000e+00> : vector<2x8x512xf32>
    %184 = tpu.matmul %181, %183, %cst_65 {dimension_numbers = #tpu.dot_dimension_numbers<[2], [0], [0, 1], [1], [0, 0, 0, 1, 1, 1], [], []>} : vector<2x8x128xbf16>, vector<128x512xbf16>, vector<2x8x512xf32> -> vector<2x8x512xf32>
    "tpu.trace_stop"() : () -> ()
    %c0_66 = arith.constant 0 : index
    %c0_67 = arith.constant 0 : index
    %c0_68 = arith.constant 0 : index
    %185 = vector.load %arg15[%c0_66, %c0_67, %c0_68] : memref<1x1x512xf32, #tpu.memory_space<vmem>>, vector<1x1x512xf32>
    %186 = vector.shape_cast %185 : vector<1x1x512xf32> to vector<1x512xf32>
    %187 = vector.shape_cast %186 : vector<1x512xf32> to vector<1x1x512xf32>
    %188 = vector.broadcast %187 : vector<1x1x512xf32> to vector<2x8x512xf32>
    %189 = arith.addf %184, %188 : vector<2x8x512xf32>
    %cst_69 = arith.constant 1.702000e+00 : f32
    %190 = vector.broadcast %cst_69 : f32 to vector<2x8x512xf32>
    %191 = arith.mulf %190, %189 : vector<2x8x512xf32>
    %192 = arith.negf %191 : vector<2x8x512xf32>
    %193 = math.exp %192 : vector<2x8x512xf32>
    %cst_70 = arith.constant 1.000000e+00 : f32
    %194 = vector.broadcast %cst_70 : f32 to vector<2x8x512xf32>
    %195 = arith.addf %194, %193 : vector<2x8x512xf32>
    %196 = arith.divf %194, %195 : vector<2x8x512xf32>
    %197 = arith.mulf %189, %196 : vector<2x8x512xf32>
    %198 = arith.truncf %197 : vector<2x8x512xf32> to vector<2x8x512xbf16>
    %c0_71 = arith.constant 0 : index
    %c0_72 = arith.constant 0 : index
    %c0_73 = arith.constant 0 : index
    %199 = vector.load %arg16[%c0_71, %c0_72, %c0_73] : memref<1x512x128xbf16, #tpu.memory_space<vmem>>, vector<1x512x128xbf16>
    %200 = vector.shape_cast %199 : vector<1x512x128xbf16> to vector<512x128xbf16>
    "tpu.trace_start"() <{level = 10 : i32, message = "bse,ed->bsd"}> : () -> ()
    %cst_74 = arith.constant dense<0.000000e+00> : vector<2x8x128xf32>
    %201 = tpu.matmul %198, %200, %cst_74 {dimension_numbers = #tpu.dot_dimension_numbers<[2], [0], [0, 1], [1], [0, 0, 0, 1, 1, 1], [], []>} : vector<2x8x512xbf16>, vector<512x128xbf16>, vector<2x8x128xf32> -> vector<2x8x128xf32>
    "tpu.trace_stop"() : () -> ()
    %c0_75 = arith.constant 0 : index
    %c0_76 = arith.constant 0 : index
    %c0_77 = arith.constant 0 : index
    %202 = vector.load %arg17[%c0_75, %c0_76, %c0_77] : memref<1x1x128xf32, #tpu.memory_space<vmem>>, vector<1x1x128xf32>
    %203 = vector.shape_cast %202 : vector<1x1x128xf32> to vector<1x128xf32>
    %204 = vector.shape_cast %203 : vector<1x128xf32> to vector<1x1x128xf32>
    %205 = vector.broadcast %204 : vector<1x1x128xf32> to vector<2x8x128xf32>
    %206 = arith.addf %201, %205 : vector<2x8x128xf32>
    %207 = arith.addf %152, %206 : vector<2x8x128xf32>
    %c0_78 = arith.constant 0 : index
    %c0_79 = arith.constant 0 : index
    %c0_80 = arith.constant 0 : index
    %208 = vector.load %arg19[%c0_78, %c0_79, %c0_80] : memref<2x8x128xf32, #tpu.memory_space<vmem>>, vector<2x8x128xf32>
    tpu.vector_store %arg19[%c0_78, %c0_79, %c0_80], %207 {strides = array<i32>} : memref<2x8x128xf32, #tpu.memory_space<vmem>>, vector<2x8x128xf32>,
    %c1_i32 = arith.constant 1 : i32
    %209 = arith.cmpi eq, %arg0, %c1_i32 : i32
    %210 = arith.extui %209 : i1 to i32
    %c0_i32_81 = arith.constant 0 : i32
    %211 = arith.cmpi ne, %210, %c0_i32_81 : i32
    scf.if %211 {
      %c0_82 = arith.constant 0 : index
      %c0_83 = arith.constant 0 : index
      %c0_84 = arith.constant 0 : index
      %212 = vector.load %arg2[%c0_82, %c0_83, %c0_84] : memref<2x8x1xf32, #tpu.memory_space<vmem>>, vector<2x8x1xf32>
      %213 = vector.broadcast %212 : vector<2x8x1xf32> to vector<2x8x128xf32>
      %214 = arith.mulf %213, %207 : vector<2x8x128xf32>
      %cst_85 = arith.constant dense<0.000000e+00> : vector<2x128xf32>
      %215 = vector.multi_reduction <add>, %214, %cst_85 [1] : vector<2x8x128xf32> to vector<2x128xf32>
      %c0_86 = arith.constant 0 : index
      %c0_87 = arith.constant 0 : index
      %216 = vector.load %arg3[%c0_86, %c0_87] : memref<1x128xf32, #tpu.memory_space<vmem>>, vector<1x128xf32>
      %c0_88 = arith.constant 0 : index
      %c0_89 = arith.constant 0 : index
      %217 = vector.load %arg4[%c0_88, %c0_89] : memref<1x128xf32, #tpu.memory_space<vmem>>, vector<1x128xf32>
      %cst_90 = arith.constant dense<0.000000e+00> : vector<2xf32>
      %218 = vector.multi_reduction <add>, %215, %cst_90 [1] : vector<2x128xf32> to vector<2xf32>
      %219 = vector.shape_cast %218 : vector<2xf32> to vector<2x1xf32>
      %cst_91 = arith.constant 1.280000e+02 : f32
      %220 = vector.broadcast %cst_91 : f32 to vector<2x1xf32>
      %221 = arith.divf %219, %220 : vector<2x1xf32>
      %222 = vector.broadcast %221 : vector<2x1xf32> to vector<2x128xf32>
      %223 = arith.subf %215, %222 : vector<2x128xf32>
      %224 = arith.mulf %223, %223 : vector<2x128xf32>
      %cst_92 = arith.constant dense<0.000000e+00> : vector<2xf32>
      %225 = vector.multi_reduction <add>, %224, %cst_92 [1] : vector<2x128xf32> to vector<2xf32>
      %226 = vector.shape_cast %225 : vector<2xf32> to vector<2x1xf32>
      %cst_93 = arith.constant 1.280000e+02 : f32
      %227 = vector.broadcast %cst_93 : f32 to vector<2x1xf32>
      %228 = arith.divf %226, %227 : vector<2x1xf32>
      %229 = vector.broadcast %221 : vector<2x1xf32> to vector<2x128xf32>
      %230 = arith.subf %215, %229 : vector<2x128xf32>
      %cst_94 = arith.constant 9.99999974E-6 : f32
      %231 = vector.broadcast %cst_94 : f32 to vector<2x1xf32>
      %232 = arith.addf %228, %231 : vector<2x1xf32>
      %233 = math.rsqrt %232 : vector<2x1xf32>
      %234 = vector.broadcast %233 : vector<2x1xf32> to vector<2x128xf32>
      %235 = arith.mulf %230, %234 : vector<2x128xf32>
      %236 = vector.broadcast %216 : vector<1x128xf32> to vector<2x128xf32>
      %237 = arith.mulf %235, %236 : vector<2x128xf32>
      %238 = vector.broadcast %217 : vector<1x128xf32> to vector<2x128xf32>
      %239 = arith.addf %237, %238 : vector<2x128xf32>
      %240 = arith.truncf %239 : vector<2x128xf32> to vector<2x128xbf16>
      %c0_95 = arith.constant 0 : index
      %c0_96 = arith.constant 0 : index
      %241 = vector.load %arg5[%c0_95, %c0_96] : memref<128x128xbf16, #tpu.memory_space<vmem>>, vector<128x128xbf16>
      %cst_97 = arith.constant dense<0.000000e+00> : vector<2x128xf32>
      %242 = tpu.matmul %240, %241, %cst_97 {dimension_numbers = #tpu.dot_dimension_numbers<[1], [0], [0], [1], [0, 0, 1, 1], [], []>} : vector<2x128xbf16>, vector<128x128xbf16>, vector<2x128xf32> -> vector<2x128xf32>
      %c0_98 = arith.constant 0 : index
      %c0_99 = arith.constant 0 : index
      %243 = vector.load %arg18[%c0_98, %c0_99] : memref<2x128xf32, #tpu.memory_space<vmem>>, vector<2x128xf32>
      tpu.vector_store %arg18[%c0_98, %c0_99], %242 {strides = array<i32>} : memref<2x128xf32, #tpu.memory_space<vmem>>, vector<2x128xf32>,
    } else {
    }
    return
  }
  func.func @transform_0(%arg0: i32) -> (i32, i32, i32) {
    %c0_i32 = arith.constant 0 : i32
    %c0_i32_0 = arith.constant 0 : i32
    %c0_i32_1 = arith.constant 0 : i32
    %c0_i32_2 = arith.constant 0 : i32
    return %c0_i32, %c0_i32_0, %c0_i32_1 : i32, i32, i32
  }
  func.func @transform_1(%arg0: i32) -> (i32, i32, i32) {
    %c0_i32 = arith.constant 0 : i32
    %c0_i32_0 = arith.constant 0 : i32
    %c0_i32_1 = arith.constant 0 : i32
    %c0_i32_2 = arith.constant 0 : i32
    return %c0_i32, %c0_i32_0, %c0_i32_1 : i32, i32, i32
  }
  func.func @transform_2(%arg0: i32) -> (i32, i32) {
    %c0_i32 = arith.constant 0 : i32
    %c0_i32_0 = arith.constant 0 : i32
    %c0_i32_1 = arith.constant 0 : i32
    return %c0_i32, %c0_i32_0 : i32, i32
  }
  func.func @transform_3(%arg0: i32) -> (i32, i32) {
    %c0_i32 = arith.constant 0 : i32
    %c0_i32_0 = arith.constant 0 : i32
    %c0_i32_1 = arith.constant 0 : i32
    return %c0_i32, %c0_i32_0 : i32, i32
  }
  func.func @transform_4(%arg0: i32) -> (i32, i32) {
    %c0_i32 = arith.constant 0 : i32
    %c0_i32_0 = arith.constant 0 : i32
    %c0_i32_1 = arith.constant 0 : i32
    return %c0_i32, %c0_i32_0 : i32, i32
  }
  func.func @transform_5(%arg0: i32) -> (i32, i32, i32) {
    %c0_i32 = arith.constant 0 : i32
    %c0_i32_0 = arith.constant 0 : i32
    %c0_i32_1 = arith.constant 0 : i32
    return %arg0, %c0_i32, %c0_i32_0 : i32, i32, i32
  }
  func.func @transform_6(%arg0: i32) -> (i32, i32, i32) {
    %c0_i32 = arith.constant 0 : i32
    %c0_i32_0 = arith.constant 0 : i32
    %c0_i32_1 = arith.constant 0 : i32
    return %arg0, %c0_i32, %c0_i32_0 : i32, i32, i32
  }
  func.func @transform_7(%arg0: i32) -> (i32, i32, i32) {
    %c0_i32 = arith.constant 0 : i32
    %c0_i32_0 = arith.constant 0 : i32
    %c0_i32_1 = arith.constant 0 : i32
    return %arg0, %c0_i32, %c0_i32_0 : i32, i32, i32
  }
  func.func @transform_8(%arg0: i32) -> (i32, i32, i32) {
    %c0_i32 = arith.constant 0 : i32
    %c0_i32_0 = arith.constant 0 : i32
    %c0_i32_1 = arith.constant 0 : i32
    return %arg0, %c0_i32, %c0_i32_0 : i32, i32, i32
  }
  func.func @transform_9(%arg0: i32) -> (i32, i32, i32) {
    %c0_i32 = arith.constant 0 : i32
    %c0_i32_0 = arith.constant 0 : i32
    %c0_i32_1 = arith.constant 0 : i32
    return %arg0, %c0_i32, %c0_i32_0 : i32, i32, i32
  }
  func.func @transform_10(%arg0: i32) -> (i32, i32, i32) {
    %c0_i32 = arith.constant 0 : i32
    %c0_i32_0 = arith.constant 0 : i32
    %c0_i32_1 = arith.constant 0 : i32
    return %arg0, %c0_i32, %c0_i32_0 : i32, i32, i32
  }
  func.func @transform_11(%arg0: i32) -> (i32, i32, i32) {
    %c0_i32 = arith.constant 0 : i32
    %c0_i32_0 = arith.constant 0 : i32
    %c0_i32_1 = arith.constant 0 : i32
    return %arg0, %c0_i32, %c0_i32_0 : i32, i32, i32
  }
  func.func @transform_12(%arg0: i32) -> (i32, i32, i32) {
    %c0_i32 = arith.constant 0 : i32
    %c0_i32_0 = arith.constant 0 : i32
    %c0_i32_1 = arith.constant 0 : i32
    return %arg0, %c0_i32, %c0_i32_0 : i32, i32, i32
  }
  func.func @transform_13(%arg0: i32) -> (i32, i32, i32) {
    %c0_i32 = arith.constant 0 : i32
    %c0_i32_0 = arith.constant 0 : i32
    %c0_i32_1 = arith.constant 0 : i32
    return %arg0, %c0_i32, %c0_i32_0 : i32, i32, i32
  }
  func.func @transform_14(%arg0: i32) -> (i32, i32, i32) {
    %c0_i32 = arith.constant 0 : i32
    %c0_i32_0 = arith.constant 0 : i32
    %c0_i32_1 = arith.constant 0 : i32
    return %arg0, %c0_i32, %c0_i32_0 : i32, i32, i32
  }
  func.func @transform_15(%arg0: i32) -> (i32, i32, i32) {
    %c0_i32 = arith.constant 0 : i32
    %c0_i32_0 = arith.constant 0 : i32
    %c0_i32_1 = arith.constant 0 : i32
    return %arg0, %c0_i32, %c0_i32_0 : i32, i32, i32
  }
  func.func @transform_16(%arg0: i32) -> (i32, i32, i32) {
    %c0_i32 = arith.constant 0 : i32
    %c0_i32_0 = arith.constant 0 : i32
    %c0_i32_1 = arith.constant 0 : i32
    return %arg0, %c0_i32, %c0_i32_0 : i32, i32, i32
  }
  func.func @transform_17(%arg0: i32) -> (i32, i32) {
    %c0_i32 = arith.constant 0 : i32
    %c0_i32_0 = arith.constant 0 : i32
    %c0_i32_1 = arith.constant 0 : i32
    return %c0_i32, %c0_i32_0 : i32, i32
  }
}

</mosaic_0001>

<bundles_post_ra>
// kernel: text_clip_forward.1
= control target key start
LH: loop header
LB: loop body
LE: loop exit
PB: predicated region body
PF: predicated region fallthrough
CT: control target
= control target key end

     0   :  { %s5167_s0 = inlined_call_operand.vmem [shape: f32[2,8,128], index: 0, kind: input, shape index: {}]   ;;  %s5168_s1 = inlined_call_operand.vmem [shape: f32[2,8,1], index: 1, kind: input, shape index: {}]   ;;  %s5169_s2 = inlined_call_operand.vmem [shape: f32[1,128], index: 2, kind: input, shape index: {}]   ;;  %s5170_s3 = inlined_call_operand.vmem [shape: f32[1,128], index: 3, kind: input, shape index: {}]   ;;  %s5171_s4 = inlined_call_operand.vmem [shape: bf16[128,128], index: 4, kind: input, shape index: {}]   ;;  %s5172_s5 = inlined_call_operand.vmem [shape: f32[2,1,128], index: 5, kind: input, shape index: {}]   ;;  %s5173_s6 = inlined_call_operand.vmem [shape: f32[2,1,128], index: 6, kind: input, shape index: {}]   ;;  %s5174_s7 = inlined_call_operand.hbm [shape: bf16[2,128,384], index: 7, kind: input, shape index: {}]   ;;  %s5175_s8 = inlined_call_operand.vmem [shape: f32[2,1,384], index: 8, kind: input, shape index: {}]   ;;  %s5176_s9 = inlined_call_operand.vmem [shape: bf16[2,128,128], index: 9, kind: input, shape index: {}]   ;;  %s5177_s10 = inlined_call_operand.vmem [shape: f32[2,1,128], index: 10, kind: input, shape index: {}]   ;;  %s5178_s11 = inlined_call_operand.vmem [shape: f32[2,1,128], index: 11, kind: input, shape index: {}]   ;;  %s5179_s12 = inlined_call_operand.vmem [shape: f32[2,1,128], index: 12, kind: input, shape index: {}]   ;;  %s5180_s13 = inlined_call_operand.hbm [shape: bf16[2,128,512], index: 13, kind: input, shape index: {}]   ;;  %s5181_s14 = inlined_call_operand.vmem [shape: f32[2,1,512], index: 14, kind: input, shape index: {}]   ;;  %s5182_s15 = inlined_call_operand.hbm [shape: bf16[2,512,128], index: 15, kind: input, shape index: {}]   ;;  %s5183_s16 = inlined_call_operand.vmem [shape: f32[2,1,128], index: 16, kind: input, shape index: {}]   ;;  %s5184_s17 = inlined_call_operand.hbm [shape: f32[2,128], index: 17, kind: output, shape index: {}]  }
   0x1   :  { %5194 = sst [smem:[#allocation16_spill]] %s5167_s0 }
   0x2   :  { %5195 = sst [smem:[#allocation17_spill]] %s5168_s1 }
   0x3   :  { %5196 = sst [smem:[#allocation18_spill]] %s5169_s2 }
   0x4   :  { %5197 = sst [smem:[#allocation19_spill]] %s5170_s3 }
   0x5   :  { %5198 = sst [smem:[#allocation20_spill]] %s5171_s4 }
   0x6   :  { %5199 = sst [smem:[#allocation21_spill]] %s5174_s7 }
   0x7   :  { %5200 = sst [smem:[#allocation22_spill]] %s5176_s9 }
   0x8   :  { %5201 = sst [smem:[#allocation23_spill]] %s5180_s13 }
   0x9   :  { %5202 = sst [smem:[#allocation24_spill]] %s5181_s14 }
   0xa   :  { %5203 = sst [smem:[#allocation25_spill]] %s5182_s15 }
   0xb   :  { %5204 = sst [smem:[#allocation26_spill]] %s5183_s16 }
   0xc   :  { %5205 = sst [smem:[#allocation27_spill]] %s5184_s17 }
   0xd   :  { %22 = vsyncpa [#allocation4], 0 }
   0xe   :  { %24 = vsyncpa [#allocation4 + $0x1], 0 }
   0xf   :  { %25 = vsyncpa [#allocation7], 0 }
  0x10   :  { %27 = vsyncpa [#allocation7 + $0x1], 0 }
  0x11   :  { %28 = vsyncpa [#allocation5], 0  ;;  %s4454_s24 = smov 0   ;;  %s4456_s25 = smov 0  }
  0x12   :  { %s4458_s26 = smov 0   ;;  %s4460_s27 = smov 0  }
  0x13 LB: > { %5206 = sst [smem:[#allocation13_spill]] %s4338_s26  ;;  %s4473_s28 = sadd.s32 4294967295, %s4342_s27   ;;  %s4342_s27 = sphi %s4460_s27, %s5235_s27   ;;  %s4338_s26 = sphi %s4458_s26, %s5237_s26   ;;  %s4334_s25 = sphi %s4456_s25, %s5239_s25   ;;  %s4330_s24 = sphi %s4454_s24, %s5238_s24  }
  0x14   : > { %s4476_s29 = sadd.s32 1, %s4342_s27   ;;  %s198_s30 = sadd.s32 1, %s4338_s26 }
  0x15   : > { %5207 = sst [smem:[#allocation14_spill]] %s4476_s29  ;;  %s195_s0 = ssub.s32 %s4342_s27, %s4476_s29 }
  0x16   : > { %p196_p0 = scmp.eq.s32.totalorder %s195_s0, 0  ;;  %p205_p1 = scmp.ne.s32.totalorder %s4338_s26, %s4334_s25 }
  0x17   : > { %p206_p2 = scmp.eq.s32.totalorder %s4342_s27, 0  ;;  %p211_p3 = scmp.ne.s32.totalorder %s4334_s25, %s4330_s24 }
  0x18   : > { %s4486_s18 = scalar_select %p196_p0, %s4338_s26, %s198_s30  }
  0x19   : > { %p207_p4 = por %p206_p2, %p205_p1  ;;  %p212_p5 = scmp.eq.s32.totalorder %s4473_s28, 0 }
  0x1a   : > { %5208 = sst [smem:[#allocation15_spill]] %s4486_s18  ;;  %p3935_p6 = scmp.lt.s32.totalorder %s4342_s27, 2 }
  0x1b   : > { %p4490_p7 = por %p212_p5, %p211_p3  ;;  %s4495_s1 = sand.u32 1, %s4338_s26  }
  0x1c   : > { %p4497_p8 = pnand %p3935_p6, %p207_p4  ;;  %s571_s21 = sand.u32 1, %s4342_s27  }
  0x1d   : > { %s5209_s19 = scalar_select %p4490_p7, 1, 0 }
  0x1e   : > { %s5190_s22 = sshll.u32 %s4495_s1, 8  ;;  %s5191_s23 = sshll.u32 %s4342_s27, 12 }
  0x1f   : > { %s575_s24 = scalar_lea.vmem [#allocation6], %s5190_s22  ;;  %s5211_s13 = sld [smem:[#allocation23_spill]] }
  0x20   : > { %s582_s0 = sshll.u32 %s575_s24, 4  ;;  %s4515_s26 = scalar_lea.sflag [#allocation7], %s571_s21  ;;  %s4513_s0 = int_to_ptr.vmem [resolvable:$true] %s582_s0 }
  0x21   : > { %p4521_p10 = pneg %p4497_p8 }
  0x25   : > { %s4511_s29 = scalar_lea.hbm %s5211_s13, %s5191_s23  ;;  %s4197_s30 = scalar_lea.hbm %s5211_s13, 8192 }
  0x26   : > { %s4192_s17 = scalar_lea.hbm %s4511_s29, 4096  ;;  %p4198_p13 = scmp.lt.s32.totalorder %s4511_s29, %s5211_s13 }
  0x27   : > { %p4193_p9 = scmp.ne.s32.totalorder %s4511_s29, %s4192_s17  ;;  %p4199_p0 = scmp.lt.s32.totalorder %s4197_s30, %s4192_s17 }
  0x29   : > { %p4195_p11 = pnand %p4521_p10, %p4193_p9  ;;  %p4200_p1 = por %p4199_p0, %p4198_p13 }
  0x2b   : > { %p4196_p12 = pneg %p4195_p11 }
  0x2d   : > { %p4201_p2 = pnand %p4200_p1, %p4196_p12 }
  0x2f   : > { %4204 = shalt.err (!%p4201_p2)
}
  0x30   : > { %s4205_s21 = scalar_lea.vmem %s4513_s0, 4096  ;;  %s4344_s2 = smov [#allocation6]  }
  0x31   : > { %p4206_p3 = scmp.ne.s32.totalorder %s4513_s0, %s4205_s21  ;;  %s4210_s18 = sshll.u32 %s4344_s2, 4  ;;  %s4211_s18 = int_to_ptr.vmem [resolvable:$false] %s4210_s18 }
  0x32   : > { %s4212_s24 = scalar_lea.vmem %s4211_s18, 8192  ;;  %p4213_p6 = scmp.lt.s32.totalorder %s4513_s0, %s4211_s18 }
  0x33   : > { %p4208_p4 = pnand %p4206_p3, %p4521_p10  ;;  %p4214_p9 = scmp.lt.s32.totalorder %s4212_s24, %s4205_s21 }
  0x35   : > { %p4209_p5 = pneg %p4208_p4  ;;  %p4215_p11 = por %p4214_p9, %p4213_p6 }
  0x37   : > { %p4216_p7 = pnand %p4215_p11, %p4209_p5 }
  0x39   : > { %4219 = shalt.err (!%p4216_p7)
}
  0x3a   : > { %s4345_s17 = smov 256   ;;  %s4346_s2 = smov 16  }
  0x3b   : > { %3931 = dma.hbm_to_vmem [thread:$0]  (!%p4497_p8), %s4511_s29, 4096, %s4513_s0, %s4515_s26, %s4345_s17, %s4345_s17, %s4346_s2  }
  0x3c   : > { %s5213_s22 = sshll.u32 %s4342_s27, 12  ;;  %s5214_s15 = sld [smem:[#allocation25_spill]] }
  0x3d   : > { %s5215_s18 = sshll.u32 %s4495_s1, 8  ;;  %p3462_p7 = scmp.ge.s32.totalorder %s4342_s27, 1 }
  0x3e   : > { %s603_s24 = scalar_lea.vmem [#allocation8], %s5215_s18  ;;  %p624_p12 = scmp.lt.s32.totalorder %s4342_s27, 3 }
  0x3f   : > { %s610_s13 = sshll.u32 %s603_s24, 4  ;;  %s3911_s4 = smul.u32 192, %s4495_s1  ;;  %s4554_s13 = int_to_ptr.vmem [resolvable:$true] %s610_s13 }
  0x40   : > { %p4558_p13 = pnand %p3462_p7, %p624_p12  ;;  %s3912_s29 = smul.u32 3072, %s4342_s27 }
  0x41   : > { %s5217_s7 = sld [smem:[#allocation21_spill]]  ;;  %s518_s30 = scalar_lea.sflag [#allocation4], %s4495_s1 }
  0x42   : > { %s4549_s21 = scalar_lea.hbm %s5214_s15, %s5213_s22  ;;  %s521_s22 = scalar_lea.vmem [#allocation3], %s3911_s4 }
  0x43   : > { %s5216_s16 = scalar_select %p4558_p13, 1, 0 }
  0x44   : > { %s528_s23 = sshll.u32 %s521_s22, 4  ;;  %s4568_s23 = int_to_ptr.vmem [resolvable:$true] %s528_s23 }
  0x47   : > { %s4566_s2 = scalar_lea.hbm %s5217_s7, %s3912_s29  ;;  %s4225_s14 = scalar_lea.hbm %s5217_s7, 6144 }
  0x48   : > { %s4220_s18 = scalar_lea.hbm %s4566_s2, 3072  ;;  %p4226_p3 = scmp.lt.s32.totalorder %s4566_s2, %s5217_s7 }
  0x49   : > { %p4221_p0 = scmp.ne.s32.totalorder %s4566_s2, %s4220_s18  ;;  %p4227_p4 = scmp.lt.s32.totalorder %s4225_s14, %s4220_s18 }
  0x4b   : > { %p4223_p1 = pnand %p4221_p0, %p4521_p10  ;;  %p4228_p5 = por %p4227_p4, %p4226_p3 }
  0x4d   : > { %p4224_p2 = pneg %p4223_p1 }
  0x4f   : > { %p4229_p6 = pnand %p4228_p5, %p4224_p2 }
  0x51   : > { %4232 = shalt.err (!%p4229_p6)
}
  0x52   : > { %s4233_s4 = scalar_lea.vmem %s4568_s23, 3072  ;;  %s4347_s17 = smov [#allocation3]  }
  0x53   : > { %p4234_p9 = scmp.ne.s32.totalorder %s4568_s23, %s4233_s4  ;;  %s4238_s22 = sshll.u32 %s4347_s17, 4  ;;  %s4239_s22 = int_to_ptr.vmem [resolvable:$false] %s4238_s22 }
  0x54   : > { %s4240_s24 = scalar_lea.vmem %s4239_s22, 6144  ;;  %p4241_p12 = scmp.lt.s32.totalorder %s4568_s23, %s4239_s22 }
  0x55   : > { %p4236_p11 = pnand %p4234_p9, %p4521_p10  ;;  %p4242_p0 = scmp.lt.s32.totalorder %s4240_s24, %s4233_s4 }
  0x57   : > { %p4237_p7 = pneg %p4236_p11  ;;  %p4243_p1 = por %p4242_p0, %p4241_p12 }
  0x59   : > { %p4244_p13 = pnand %p4243_p1, %p4237_p7 }
  0x5b   : > { %4247 = shalt.err (!%p4244_p13)
}
  0x5c   : > { %s4348_s14 = smov 192   ;;  %s4349_s18 = smov 12  }
  0x5d   : > { %3928 = dma.hbm_to_vmem [thread:$0]  (!%p4497_p8), %s4566_s2, 3072, %s4568_s23, %s518_s30, %s4348_s14, %s4348_s14, %s4349_s18  }
  0x5e   : > { %s4248_s27 = scalar_lea.hbm %s4549_s21, 4096  ;;  %s4253_s4 = scalar_lea.hbm %s5214_s15, 8192 }
  0x5f   : > { %p4249_p2 = scmp.ne.s32.totalorder %s4549_s21, %s4248_s27  ;;  %p4254_p13 = scmp.lt.s32.totalorder %s4549_s21, %s5214_s15 }
  0x60   : > { %p4255_p5 = scmp.lt.s32.totalorder %s4253_s4, %s4248_s27 }
  0x61   : > { %p4251_p3 = pnand %p4249_p2, %p4521_p10 }
  0x62   : > { %p4256_p6 = por %p4255_p5, %p4254_p13 }
  0x63   : > { %p4252_p4 = pneg %p4251_p3 }
  0x65   : > { %p4257_p9 = pnand %p4256_p6, %p4252_p4 }
  0x67   : > { %4260 = shalt.err (!%p4257_p9)
}
  0x68   : > { %s4261_s1 = scalar_lea.vmem %s4554_s13, 4096  ;;  %s4350_s2 = smov [#allocation8]  }
  0x69   : > { %p4262_p11 = scmp.ne.s32.totalorder %s4554_s13, %s4261_s1  ;;  %s4266_s23 = sshll.u32 %s4350_s2, 4  ;;  %s4267_s23 = int_to_ptr.vmem [resolvable:$false] %s4266_s23 }
  0x6a   : > { %s4268_s30 = scalar_lea.vmem %s4267_s23, 8192  ;;  %p4269_p0 = scmp.lt.s32.totalorder %s4554_s13, %s4267_s23 }
  0x6b   : > { %p4264_p7 = pnand %p4262_p11, %p4521_p10  ;;  %p4270_p1 = scmp.lt.s32.totalorder %s4268_s30, %s4261_s1 }
  0x6d   : > { %p4265_p12 = pneg %p4264_p7  ;;  %p4271_p2 = por %p4270_p1, %p4269_p0 }
  0x6f   : > { %p4272_p3 = pnand %p4271_p2, %p4265_p12 }
  0x71   : > { %4275 = shalt.err (!%p4272_p3)
}
  0x72   : > { %s4351_s24 = smov 64   ;;  %s4352_s14 = smov 4  }
  0x73   : > { %3934 = dma.hbm_to_vmem [thread:$0]  (!%p4497_p8), %s4549_s21, 4096, %s4554_s13, %s4515_s26, %s4351_s24, %s4351_s24, %s4352_s14  }
  0x74   : > { %p5218_p10 = scmp.ne.s32.totalorder %s5216_s16, 0 }
  0x75   : > { %s630_s3 = sand.u32 (!%p5218_p10), 1, %s4334_s25   ;;  %p5219_p4 = scmp.ne.s32.totalorder (!%p5218_p10), %s5209_s19, 0 }
  0x76   : > { %628 = sbr.rel (%p5218_p10) target bundleno = 4962 (0x1362), region = 88  ;;  %s631_s27 = scalar_lea.sflag (!%p5218_p10), [#allocation4], %s630_s3 }
  0x77   : > { %s3913_s18 = smul.u32 (!%p5218_p10), 192, %s630_s3 }
  0x79   : > { %s4617_s0 = scalar_lea.vmem (!%p5218_p10), [#allocation3], %s3913_s18 }
  0x7b   : > { %4317 = dma.done.wait (%p5219_p4), %s631_s27, 3072  }
  0x7c   : > { %4319 = vsyncadd (%p5219_p4), %s631_s27, 4294964224  ;;  %s639_s29 = sand.u32 1, %s4473_s28   ;;  %s3463_s20 = sshll.u32 %s630_s3, 8 }
  0x7d   : > { %s640_s13 = scalar_lea.sflag [#allocation7], %s639_s29  ;;  %s4624_s26 = scalar_lea.vmem [#allocation6], %s3463_s20 }
  0x7e   : > { %4321 = dma.done.wait (%p5219_p4), %s640_s13, 8192  }
  0x7f   : > { %4323 = vsyncadd (%p5219_p4), %s640_s13, 4294959104  ;;  %p739_p8 = scmp.lt.s32.totalorder %s4473_s28, 1  ;;  %s5220_s9 = sld [smem:[#allocation22_spill]] }
  0x80   : > { %s5222_s27 = sld [smem:[#allocation26_spill]]  ;;  %p3468_p13 = scmp.ne.s32.totalorder %s4473_s28, 0 }
  0x81   : > { %s4632_s16 = scalar_select %p739_p8, %s4473_s28, 1 }
  0x82   : > { %s5223_s4 = sld [smem:[#allocation16_spill]] (!%p3468_p13) }
  0x83   : > { %s3914_s2 = smul.u32 3, %s4632_s16  ;;  %s3626_s23 = sshll.u32 %s4632_s16, 6 }
  0x84   : > { %s759_s19 = scalar_lea.vmem %s5178_s11, %s4632_s16  ;;  %s762_s7 = scalar_lea.vmem %s5179_s12, %s4632_s16 }
  0x85   : > { %s4647_s14 = scalar_lea.vmem %s5220_s9, %s3626_s23  ;;  %s4656_s21 = scalar_lea.vmem %s5175_s8, %s3914_s2 }
  0x86   : > { %s3467_s30 = sshll.u32 %s4632_s16, 2  ;;  %s5221_s9 = sld [smem:[#allocation24_spill]] }
  0x87   : > { %s769_s29 = scalar_lea.vmem %s5222_s27, %s4632_s16  ;;  %s4676_s2 = scalar_lea.vmem [#allocation8], %s3463_s20 }
  0x88   : > { %774 = sbr.rel (%p3468_p13) target bundleno = 144 (0x90), region = 104 }
  0x8c   : > { %s4670_s15 = scalar_lea.vmem %s5221_s9, %s3467_s30 }
  0x8d   : > { %v775_v0 = vld [vmem:[%s5223_s4] sm:$0xff]  ;;  %v776_v1 = vld [vmem:[%s5223_s4 + $0x8] sm:$0xff]  ;;  %v4353_v2 = vmov 0.0  }
  0x8e   : > { %777 = vst [vmem:[#allocation2] sm:$0xff] %v775_v0  ;;  %778 = vst [vmem:[#allocation2 + $0x8] sm:$0xff] %v776_v1 }
  0x8f   : > { %779 = vst [vmem:[#allocation9] sm:$0x3] %v4353_v2 }
  0x90 PF: > { %v3987_v5 = vld [vmem:[%s4617_s0 + $0xac] ss:$12 sps:$4 sm:$0xff]   ;;  %v3989_v6 = vld [vmem:[%s4617_s0 + $0xa8] ss:$12 sps:$4 sm:$0xff]   ;;  %v4354_v7 = vmov 0.0   ;;  %v4355_v30 = vmov 0   ;;  %s5224_s20 = scalar_lea.vmem %s5172_s5, %s4632_s16  ;;  %s5225_s23 = scalar_lea.vmem %s5173_s6, %s4632_s16  ;;  %v859_v56 = vlaneseq }
  0x91   : > { %3743 = vmatprep.subr.bf16.mxu1 %v4354_v7  ;;  %v3990_v8 = vld [vmem:[%s4617_s0 + $0xb0] ss:$12 sps:$4 sm:$0xff]   ;;  %1008 = vmatprep.subr.bf16.mxu0 %v3987_v5  ;;  %v3991_v17 = vld [vmem:[%s4617_s0 + $0x94] ss:$12 sps:$4 sm:$0xff]   ;;  %v3994_v19 = vld [vmem:[%s4617_s0 + $0x98] ss:$12 sps:$4 sm:$0xff]   ;;  %s5228_s17 = scalar_lea.vmem %s5177_s10, %s4632_s16 }
  0x92   : > { %1009 = vmatpush1.bf16.msra.mxu0 %v3989_v6  ;;  %3744 = vmatpush3.bf16.msra.mxu1 %v3990_v8  ;;  %v3993_v18 = vld [vmem:[%s4617_s0 + $0x90] ss:$12 sps:$4 sm:$0xff]   ;;  %v3997_v21 = vld [vmem:[%s4617_s0 + $0x78] ss:$12 sps:$4 sm:$0xff]   ;;  %v3998_v22 = vld [vmem:[%s4617_s0 + $0x80] ss:$12 sps:$4 sm:$0xff]  }
  0x93   : > { %3745 = vmatprep.subr.bf16.mxu1 %v4354_v7  ;;  %1010 = vmatprep.subr.bf16.mxu0 %v3991_v17  ;;  %v3995_v20 = vld [vmem:[%s4617_s0 + $0x7c] ss:$12 sps:$4 sm:$0xff]   ;;  %v3999_v23 = vld [vmem:[%s4617_s0 + $0x64] ss:$12 sps:$4 sm:$0xff]   ;;  %v4001_v24 = vld [vmem:[%s4617_s0 + $0x60] ss:$12 sps:$4 sm:$0xff]  }
  0x94   : > { %v4002_v25 = vld [vmem:[%s4617_s0 + $0x68] ss:$12 sps:$4 sm:$0xff]   ;;  %v4003_v26 = vld [vmem:[%s4617_s0 + $0x4c] ss:$12 sps:$4 sm:$0xff]   ;;  %v4006_v28 = vld [vmem:[%s4617_s0 + $0x50] ss:$12 sps:$4 sm:$0xff]   ;;  %1040 = vmatprep.mubr.bf16.mxu0 %v4355_v30 }
  0x95   : > { %v780_v3 = vld [vmem:[#allocation2] sm:$0xff]  ;;  %v781_v4 = vld [vmem:[#allocation2 + $0x8] sm:$0xff]  ;;  %vm4356_vm0 = vmmov 0   ;;  %v4014_v35 = vld [vmem:[%s4617_s0 + $0x20] ss:$12 sps:$4 sm:$0xff]   ;;  %v4746_v57 = vshrl.u32 %v859_v56, 7 }
  0x96   : > { %784 = vadd.xlane.f32.xlu0 %v780_v3  ;;  %1011 = vmatpush1.bf16.msra.mxu0 %v3993_v18  ;;  %v4005_v27 = vld [vmem:[%s4617_s0 + $0x48] ss:$12 sps:$4 sm:$0xff]   ;;  %v4009_v31 = vld [vmem:[%s4617_s0 + $0x30] ss:$12 sps:$4 sm:$0xff]   ;;  %v4010_v32 = vld [vmem:[%s4617_s0 + $0x38] ss:$12 sps:$4 sm:$0xff]  }
  0x97   : > { %3746 = vmatpush3.bf16.msra.mxu1 %v3994_v19  ;;  %1012 = vmatprep.subr.bf16.mxu0 %v3995_v20  ;;  %v4007_v29 = vld [vmem:[%s4617_s0 + $0x34] ss:$12 sps:$4 sm:$0xff]   ;;  %v4011_v33 = vld [vmem:[%s4617_s0 + $0x1c] ss:$12 sps:$4 sm:$0xff]   ;;  %v4013_v34 = vld [vmem:[%s4617_s0 + $0x18] ss:$12 sps:$4 sm:$0xff]  }
  0x98   : > { %3747 = vmatprep.subr.bf16.mxu1 %v4354_v7  ;;  %3759 = vmatprep.mubr.msk.bf16.mxu1 %vm4356_vm0, %v4354_v7  ;;  %v4015_v36 = vld [vmem:[%s4617_s0 + $0x4] ss:$12 sps:$4 sm:$0xff]   ;;  %v4017_v37 = vld [vmem:[%s4617_s0] ss:$12 sps:$4 sm:$0xff]   ;;  %v4018_v38 = vld [vmem:[%s4617_s0 + $0x8] ss:$12 sps:$4 sm:$0xff]  }
  0x99   : > { %v3469_v47 = vld [vmem:[%s5224_s20] ss:$0 sm:$0xff]  ;;  %v865_v58 = vsub.s32 1, %v4746_v57  ;;  %v869_v60 = vsub.s32 2, %v4746_v57  ;;  %v861_v0 = vsub.s32 0, %v4746_v57  ;;  %vm1117_vm1 = vcmask 261120  }
  0x9a   : > { %786 = vadd.xlane.f32.xlu0 %v781_v4  ;;  %1013 = vmatpush1.bf16.msra.mxu0 %v3997_v21  ;;  %v3470_v51 = vld [vmem:[%s5225_s23] ss:$0 sm:$0xff]  ;;  %vm1242_vm2 = vcmask 1043456   ;;  %vm1212_vm4 = vcmask 64512   ;;  %s4358_s24 = smov 64   ;;  %s4359_s3 = smov 32  }
  0x9b   : > { %3748 = vmatpush3.bf16.msra.mxu1 %v3998_v22  ;;  %1014 = vmatprep.subr.bf16.mxu0 %v3999_v23  ;;  %v857_v59 = vld [vmem:[%s4656_s21] sm:$0x7]  ;;  %s4357_s21 = smov 96   ;;  %p3609_p5 = scmp.ne.s32.totalorder %s4473_s28, 1 }
  0x9c   : > { %3749 = vmatprep.subr.bf16.mxu1 %v4354_v7  ;;  %v866_v61 = vrot.slane %v857_v59, %v865_v58  ;;  %v862_v8 = vrot.slane %v857_v59, %v861_v0  ;;  %s5231_s30 = sld [smem:[#allocation20_spill]] (!%p3609_p5) }
  0x9d   : > { %s5232_s9 = sld [smem:[#allocation18_spill]] (!%p3609_p5) }
  0x9e   : > { %1015 = vmatpush1.bf16.msra.mxu0 %v4001_v24  ;;  %s5233_s27 = sld [smem:[#allocation19_spill]] (!%p3609_p5) }
  0x9f   : > { %3750 = vmatpush3.bf16.msra.mxu1 %v4002_v25  ;;  %1016 = vmatprep.subr.bf16.mxu0 %v4003_v26  ;;  %v1095_v26 = vand.u32 127, %v859_v56 }
  0xa0   : > { %3751 = vmatprep.subr.bf16.mxu1 %v4354_v7 }
  0xa1   : > { %vm4791_vm3 = vcmp.le.s32.totalorder %v1095_v26, %v4746_v57 }
  0xa2   : > { %1017 = vmatpush1.bf16.msra.mxu0 %v4005_v27 }
  0xa3   : > { %3752 = vmatpush3.bf16.msra.mxu1 %v4006_v28  ;;  %1018 = vmatprep.subr.bf16.mxu0 %v4007_v29 }
  0xa4   : > { %3753 = vmatprep.subr.bf16.mxu1 %v4354_v7 }
  0xa6   : > { %1019 = vmatpush1.bf16.msra.mxu0 %v4009_v31 }
  0xa7   : > { %3754 = vmatpush3.bf16.msra.mxu1 %v4010_v32  ;;  %1020 = vmatprep.subr.bf16.mxu0 %v4011_v33 }
  0xa8   : > { %3755 = vmatprep.subr.bf16.mxu1 %v4354_v7 }
  0xaa   : > { %1021 = vmatpush1.bf16.msra.mxu0 %v4013_v34 }
  0xab   : > { %3756 = vmatpush3.bf16.msra.mxu1 %v4014_v35  ;;  %1022 = vmatprep.subr.bf16.mxu0 %v4015_v36 }
  0xac   : > { %3757 = vmatprep.subr.bf16.mxu1 %v4354_v7 }
  0xae   : > { %1023 = vmatpush1.bf16.msra.mxu0 %v4017_v37 }
  0xaf   : > { %3758 = vmatpush3.bf16.msra.mxu1 %v4018_v38  ;;  %3763 = vmatprep.subr.bf16.mxu0 %v4354_v7 }
  0xb0   : > { %3769 = vmatprep.subr.bf16.mxu1 %v4354_v7 }
 0x11f   : > { %v785_v9 = vpop.xlane.xlu0 %784 }
 0x120   : > { %v789_v10 = vmul.f32 0.0078125, %v785_v9 }
 0x122   : > { %v4690_v11 = vsub.f32 %v780_v3, %v789_v10  ;;  %v870_v3 = vrot.slane %v857_v59, %v869_v60 }
 0x123   : > { %v787_v12 = vpop.xlane.xlu0 %786 }
 0x124   : > { %v790_v13 = vmul.f32 0.0078125, %v787_v12  ;;  %v793_v14 = vmul.f32 %v4690_v11, %v4690_v11 }
 0x126   : > { %v4694_v15 = vsub.f32 %v781_v4, %v790_v13  ;;  %795 = vadd.xlane.f32.xlu1 %v793_v14 }
 0x128   : > { %v794_v16 = vmul.f32 %v4694_v15, %v4694_v15 }
 0x12a   : > { %797 = vadd.xlane.f32.xlu1 %v794_v16 }
 0x1af   : > { %v796_v39 = vpop.xlane.xlu1 %795 }
 0x1b0   : > { %v799_v40 = vmul.f32 0.0078125, %v796_v39 }
 0x1b2   : > { %v801_v41 = vadd.f32 1e-05, %v799_v40 }
 0x1b3   : > { %v798_v42 = vpop.xlane.xlu1 %797 }
 0x1b4   : > { %4107 = vrsqrt.f32 %v801_v41  ;;  %v800_v43 = vmul.f32 0.0078125, %v798_v42 }
 0x1b6   : > { %v802_v44 = vadd.f32 1e-05, %v800_v43 }
 0x1b8   : > { %4109 = vrsqrt.f32 %v802_v44 }
 0x1c1   : > { %v4108_v45 = vpop.eup %4107 }
 0x1c2   : > { %v805_v46 = vmul.f32 %v4108_v45, %v4690_v11 }
 0x1c4   : > { %v813_v50 = vmul.f32 %v3469_v47, %v805_v46 }
 0x1c5   : > { %v4110_v48 = vpop.eup %4109 }
 0x1c6   : > { %v806_v49 = vmul.f32 %v4110_v48, %v4694_v15  ;;  %v821_v53 = vadd.f32 %v3470_v51, %v813_v50 }
 0x1c8   : > { %v814_v52 = vmul.f32 %v3469_v47, %v806_v49 }
 0x1ca   : > { %v822_v54 = vadd.f32 %v3470_v51, %v814_v52 }
 0x1cc   : > { %v3627_v55 = vpack.c.bf16 %v822_v54, %v821_v53 }
 0x1ce   : > { %1041 = vmatmul.mubr.bf16.vlgmr.msra.gmra.mxu0 %v3627_v55  ;;  %3760 = vmatmul.mubr.bf16.vlgmr.msra.gmra.mxu1 %v3627_v55 }
 0x1cf   : > { %3765 = vmatprep.mubr.msk.bf16.mxu0 %vm4356_vm0, %v4354_v7  ;;  %3771 = vmatprep.mubr.msk.bf16.mxu1 %vm4356_vm0, %v4354_v7 }
 0x28e   : > { %v1042_v62 = vpop.f32.mrf.mxu0  ;;  %v1085_v63 = vpop.f32.mrf.mxu1 }
 0x28f   : > { %v1086_v12 = vadd.f32 %v1085_v63, %v870_v3  ;;  %v1043_v15 = vadd.f32 %v1042_v62, %v862_v8 }
 0x290   : > { %v1044_v1 = vpop.f32.mrf.mxu0  ;;  %v3761_v2 = vpop.f32.mrf.mxu1 }
 0x291   : > { %v1045_v4 = vadd.f32 %v1044_v1, %v866_v61  ;;  %v4765_v17 = vpack.c.bf16 %v1086_v12, %v1086_v12  ;;  %v4769_v20 = vpack.c.bf16 %v1043_v15, %v1043_v15 }
 0x292   : > { %v1046_v5 = vpop.f32.mrf.mxu0  ;;  %v1088_v6 = vpop.f32.mrf.mxu1 }
 0x293   : > { %v4758_v9 = vpack.c.bf16 %v1045_v4, %v1045_v4  ;;  %v1089_v18 = vadd.f32 %v1088_v6, %v870_v3  ;;  %v1047_v21 = vadd.f32 %v1046_v5, %v862_v8  ;;  %v1244_v23 = vsel %vm1242_vm2, %v4765_v17, 0 }
 0x294   : > { %v1048_v10 = vpop.f32.mrf.mxu0  ;;  %v3762_v11 = vpop.f32.mrf.mxu1 }
 0x295   : > { %v1049_v13 = vadd.f32 %v1048_v10, %v866_v61  ;;  %v1122_v14 = vsel %vm1117_vm1, %v4758_v9, 0  ;;  %v4772_v22 = vpack.c.bf16 %v1089_v18, %v1089_v18  ;;  %v4780_v24 = vpack.c.bf16 %v1047_v21, %v1047_v21 }
 0x296   : > { %3764 = vmatpush3.bf16.xpose.msra.mxu0 %v1122_v14 }
 0x297   : > { %v4762_v16 = vpack.c.bf16 %v1049_v13, %v1049_v13  ;;  %3775 = vmatprep.subr.bf16.mxu0 %v4354_v7  ;;  %v1290_v25 = vsel %vm1242_vm2, %v4772_v22, 0 }
 0x299   : > { %v1168_v19 = vsel %vm1117_vm1, %v4762_v16, 0 }
 0x29a   : > { %3770 = vmatpush3.bf16.xpose.msra.mxu1 %v1168_v19 }
 0x29b   : > { %3781 = vmatprep.subr.bf16.mxu1 %v4354_v7 }
 0x29d   : > { %3766 = vmatmul.mubr.msk.bf16.vlgmr.msra.gmra.mxu0 %vm1117_vm1, %v4769_v20 }
 0x29e   : > { %3776 = vmatpush3.bf16.msra.mxu0 %v1244_v23  ;;  %3777 = vmatprep.mubr.msk.bf16.mxu0 %vm4356_vm0, %v4354_v7 }
 0x29f   : > { %3787 = vmatprep.subr.bf16.mxu0 %v4354_v7 }
 0x2a1   : > { %3772 = vmatmul.mubr.msk.bf16.vlgmr.msra.gmra.mxu1 %vm1117_vm1, %v4780_v24 }
 0x2a2   : > { %3782 = vmatpush3.bf16.msra.mxu1 %v1290_v25  ;;  %3783 = vmatprep.mubr.msk.bf16.mxu1 %vm4356_vm0, %v4354_v7 }
 0x2a3   : > { %3793 = vmatprep.subr.bf16.mxu1 %v4354_v7 }
 0x35d   : > { %v1158_v28 = vpop.f32.mrf.mxu0 }
 0x35e   : > { %v1210_v29 = vsel %vm4791_vm3, %v1158_v28, -1e+09 }
 0x35f   : > { %v3767_v31 = vpop.f32.mrf.mxu0  ;;  %v1213_v32 = vsel %vm1212_vm4, %v1210_v29, -inf }
 0x360   : > { %1214 = vmax.xlane.f32.xlu0 %v1213_v32 }
 0x361   : > { %v1161_v33 = vpop.f32.mrf.mxu0  ;;  %v1204_v34 = vpop.f32.mrf.mxu1 }
 0x362   : > { %v1211_v35 = vsel %vm4791_vm3, %v1204_v34, -1e+09 }
 0x363   : > { %v3768_v36 = vpop.f32.mrf.mxu0  ;;  %v3773_v37 = vpop.f32.mrf.mxu1  ;;  %v1216_v38 = vsel %vm1212_vm4, %v1211_v35, -inf }
 0x364   : > { %1217 = vmax.xlane.f32.xlu1 %v1216_v38 }
 0x365   : > { %v1207_v39 = vpop.f32.mrf.mxu1 }
 0x367   : > { %v3774_v40 = vpop.f32.mrf.mxu1 }
 0x375   : > { %1390 = vrot.lane.b32.xlu1 %v4762_v16, %s4357_s21 }
 0x3e9   : > { %v1215_v41 = vpop.xlane.xlu0 %1214 }
 0x3ea   : > { %v1219_v42 = vsub.f32 %v1210_v29, %v1215_v41 }
 0x3ec   : > { %v1221_v43 = vmul.f32 1.442695, %v1219_v42 }
 0x3ed   : > { %v1218_v44 = vpop.xlane.xlu1 %1217 }
 0x3ee   : > { %4111 = vpow2.f32 %v1221_v43  ;;  %v1220_v45 = vsub.f32 %v1211_v35, %v1218_v44 }
 0x3f0   : > { %v1223_v46 = vmul.f32 1.442695, %v1220_v45 }
 0x3f1   : > { %v1391_v51 = vpop.permute.xlu1 %1390 }
 0x3f2   : > { %4113 = vpow2.f32 %v1223_v46  ;;  %v1396_v2 = vsel %vm1117_vm1, %v1391_v51, 0 }
 0x3fb   : > { %v4112_v47 = vpop.eup %4111 }
 0x3fc   : > { %v1225_v48 = vsel %vm1212_vm4, %v4112_v47, 0.0 }
 0x3fd   : > { %1226 = vadd.xlane.f32.xlu0 %v1225_v48 }
 0x3ff   : > { %v4114_v49 = vpop.eup %4113 }
 0x400   : > { %v1228_v50 = vsel %vm1212_vm4, %v4114_v49, 0.0 }
 0x401   : > { %1229 = vadd.xlane.f32.xlu1 %v1228_v50 }
 0x412   : > { %1335 = vrot.lane.b32.xlu1 %v4769_v20, %s4357_s21 }
 0x413   : > { %1338 = vrot.lane.b32.xlu0 %v4758_v9, %s4357_s21 }
 0x416   : > { %1387 = vrot.lane.b32.xlu1 %v4780_v24, %s4357_s21 }
 0x486   : > { %v1227_v52 = vpop.xlane.xlu0 %1226 }
 0x487   : > { %4115 = vrcp.f32 %v1227_v52 }
 0x48a   : > { %v1230_v53 = vpop.xlane.xlu1 %1229  ;;  %v1339_v56 = vpop.permute.xlu0 %1338 }
 0x48b   : > { %4117 = vrcp.f32 %v1230_v53  ;;  %v1344_v62 = vsel %vm1117_vm1, %v1339_v56, 0  ;;  %v4021_v53 = vld [vmem:[%s4647_s14 + $0x18] sm:$0xff]  }
 0x48e   : > { %v1336_v3 = vpop.permute.xlu1 %1335 }
 0x492   : > { %v1388_v4 = vpop.permute.xlu1 %1387 }
 0x494   : > { %v4116_v54 = vpop.eup %4115 }
 0x495   : > { %v1233_v55 = vmul.f32 %v4116_v54, %v4112_v47 }
 0x497   : > { %v1235_v59 = vpack.c.bf16 %v1233_v55, %v1233_v55 }
 0x498   : > { %v4118_v61 = vpop.eup %4117 }
 0x499   : > { %3778 = vmatmul.mubr.msk.bf16.vlgmr.msra.gmra.mxu0 %vm1212_vm4, %v1235_v59  ;;  %v1234_v63 = vmul.f32 %v4118_v61, %v4114_v49  ;;  %v4019_v59 = vld [vmem:[%s4647_s14 + $0x8] sm:$0xff]  }
 0x49a   : > { %3788 = vmatpush3.bf16.xpose.msra.mxu0 %v1344_v62  ;;  %3789 = vmatprep.mubr.msk.bf16.mxu0 %vm4356_vm0, %v4354_v7 }
 0x49b   : > { %v1236_v1 = vpack.c.bf16 %v1234_v63, %v1234_v63  ;;  %3799 = vmatprep.subr.bf16.mxu0 %v4354_v7  ;;  %v4020_v63 = vld [vmem:[%s4647_s14] sm:$0xff]  }
 0x49d   : > { %3784 = vmatmul.mubr.msk.bf16.vlgmr.msra.gmra.mxu1 %vm1212_vm4, %v1236_v1 }
 0x49e   : > { %3794 = vmatpush3.bf16.xpose.msra.mxu1 %v1396_v2  ;;  %3795 = vmatprep.mubr.msk.bf16.mxu1 %vm4356_vm0, %v4354_v7 }
 0x49f   : > { %3805 = vmatprep.subr.bf16.mxu1 %v4354_v7 }
 0x4a1   : > { %3790 = vmatmul.mubr.msk.bf16.vlgmr.msra.gmra.mxu0 %vm1117_vm1, %v1336_v3 }
 0x4a2   : > { %3801 = vmatprep.mubr.msk.bf16.mxu0 %vm4356_vm0, %v4354_v7 }
 0x4a5   : > { %3796 = vmatmul.mubr.msk.bf16.vlgmr.msra.gmra.mxu1 %vm1117_vm1, %v1388_v4  ;;  %v4022_v4 = vld [vmem:[%s4647_s14 + $0x10] sm:$0xff]  }
 0x4a6   : > { %3807 = vmatprep.mubr.msk.bf16.mxu1 %vm4356_vm0, %v4354_v7 }
 0x559   : > { %v4827_v5 = vpop.f32.mrf.mxu0 }
 0x55b   : > { %v3779_v6 = vpop.f32.mrf.mxu0 }
 0x55d   : > { %v1283_v8 = vpop.f32.mrf.mxu0  ;;  %v4829_v10 = vpop.f32.mrf.mxu1 }
 0x55e   : > { %v3629_v11 = vpack.c.bf16 %v4829_v10, %v4827_v5 }
 0x55f   : > { %v3780_v12 = vpop.f32.mrf.mxu0  ;;  %v3785_v13 = vpop.f32.mrf.mxu1 }
 0x561   : > { %v1329_v14 = vpop.f32.mrf.mxu1  ;;  %v1380_v15 = vpop.f32.mrf.mxu0 }
 0x562   : > { %v1438_v18 = vsel %vm4791_vm3, %v1380_v15, -1e+09 }
 0x563   : > { %v3786_v19 = vpop.f32.mrf.mxu1  ;;  %v3791_v21 = vpop.f32.mrf.mxu0  ;;  %v1440_v23 = vsel %vm1212_vm4, %v1438_v18, -inf }
 0x564   : > { %1441 = vmax.xlane.f32.xlu0 %v1440_v23 }
 0x565   : > { %v1383_v25 = vpop.f32.mrf.mxu0  ;;  %v1432_v26 = vpop.f32.mrf.mxu1 }
 0x566   : > { %v1439_v28 = vsel %vm4791_vm3, %v1432_v26, -1e+09 }
 0x567   : > { %v3792_v29 = vpop.f32.mrf.mxu0  ;;  %v3797_v31 = vpop.f32.mrf.mxu1  ;;  %v1443_v32 = vsel %vm1212_vm4, %v1439_v28, -inf }
 0x568   : > { %1444 = vmax.xlane.f32.xlu1 %v1443_v32 }
 0x569   : > { %v1435_v33 = vpop.f32.mrf.mxu1 }
 0x56b   : > { %v3798_v34 = vpop.f32.mrf.mxu1 }
 0x579   : > { %1514 = vrot.lane.b32.xlu1 %v4772_v22, %s4357_s21 }
 0x57d   : > { %1688 = vrot.lane.b32.xlu1 %v4758_v9, %s4358_s24 }
 0x581   : > { %1738 = vrot.lane.b32.xlu1 %v4762_v16, %s4358_s24 }
 0x585   : > { %1736 = vrot.lane.b32.xlu1 %v4780_v24, %s4358_s24 }
 0x5ed   : > { %v1442_v35 = vpop.xlane.xlu0 %1441 }
 0x5ee   : > { %v1446_v36 = vsub.f32 %v1438_v18, %v1442_v35 }
 0x5f0   : > { %v1448_v37 = vmul.f32 1.442695, %v1446_v36 }
 0x5f1   : > { %v1445_v38 = vpop.xlane.xlu1 %1444 }
 0x5f2   : > { %4119 = vpow2.f32 %v1448_v37  ;;  %v1447_v39 = vsub.f32 %v1439_v28, %v1445_v38 }
 0x5f4   : > { %v1450_v40 = vmul.f32 1.442695, %v1447_v39 }
 0x5f5   : > { %v1515_v41 = vpop.permute.xlu1 %1514 }
 0x5f6   : > { %4121 = vpow2.f32 %v1450_v40  ;;  %v1520_v42 = vsel %vm1242_vm2, %v1515_v41, 0 }
 0x5f7   : > { %3806 = vmatpush3.bf16.msra.mxu1 %v1520_v42 }
 0x5f8   : > { %3819 = vmatprep.subr.bf16.mxu1 %v4354_v7 }
 0x5f9   : > { %v1689_v62 = vpop.permute.xlu1 %1688 }
 0x5fa   : > { %v1694_v14 = vsel %vm1117_vm1, %v1689_v62, 0 }
 0x5fd   : > { %v1739_v1 = vpop.permute.xlu1 %1738 }
 0x5fe   : > { %v1744_v2 = vsel %vm1117_vm1, %v1739_v1, 0 }
 0x5ff   : > { %v4120_v43 = vpop.eup %4119 }
 0x600   : > { %v1452_v44 = vsel %vm1212_vm4, %v4120_v43, 0.0 }
 0x601   : > { %1453 = vadd.xlane.f32.xlu0 %v1452_v44  ;;  %v1737_v3 = vpop.permute.xlu1 %1736 }
 0x603   : > { %v4122_v45 = vpop.eup %4121 }
 0x604   : > { %v1455_v46 = vsel %vm1212_vm4, %v4122_v45, 0.0 }
 0x605   : > { %1456 = vadd.xlane.f32.xlu0 %v1455_v46 }
 0x61b   : > { %1465 = vrot.lane.b32.xlu0 %v4765_v17, %s4357_s21 }
 0x61f   : > { %1686 = vrot.lane.b32.xlu0 %v4769_v20, %s4358_s24 }
 0x68a   : > { %v1454_v47 = vpop.xlane.xlu0 %1453 }
 0x68b   : > { %4123 = vrcp.f32 %v1454_v47 }
 0x68e   : > { %v1457_v48 = vpop.xlane.xlu0 %1456 }
 0x68f   : > { %4125 = vrcp.f32 %v1457_v48 }
 0x692   : > { %v1466_v49 = vpop.permute.xlu0 %1465 }
 0x693   : > { %v1471_v50 = vsel %vm1242_vm2, %v1466_v49, 0 }
 0x694   : > { %3800 = vmatpush3.bf16.msra.mxu0 %v1471_v50 }
 0x695   : > { %3811 = vmatprep.subr.bf16.mxu0 %v4354_v7 }
 0x696   : > { %v1687_v21 = vpop.permute.xlu0 %1686 }
 0x698   : > { %v4124_v51 = vpop.eup %4123 }
 0x699   : > { %v1460_v52 = vmul.f32 %v4124_v51, %v4120_v43 }
 0x69b   : > { %v1462_v54 = vpack.c.bf16 %v1460_v52, %v1460_v52 }
 0x69c   : > { %v4126_v55 = vpop.eup %4125 }
 0x69d   : > { %3802 = vmatmul.mubr.msk.bf16.vlgmr.msra.gmra.mxu0 %vm1212_vm4, %v1462_v54  ;;  %v1461_v56 = vmul.f32 %v4126_v55, %v4122_v45 }
 0x69e   : > { %3812 = vmatpush3.bf16.msra.mxu0 %v4021_v53  ;;  %3815 = vmatprep.mubr.msk.bf16.mxu0 %vm4356_vm0, %v4354_v7 }
 0x69f   : > { %v1463_v61 = vpack.c.bf16 %v1461_v56, %v1461_v56  ;;  %3813 = vmatprep.subr.bf16.mxu0 %v4354_v7 }
 0x6a1   : > { %3808 = vmatmul.mubr.msk.bf16.vlgmr.msra.gmra.mxu1 %vm1212_vm4, %v1463_v61 }
 0x6a2   : > { %3820 = vmatpush3.bf16.msra.mxu1 %v4019_v59  ;;  %3823 = vmatprep.mubr.msk.bf16.mxu1 %vm4356_vm0, %v4354_v7 }
 0x6a3   : > { %3821 = vmatprep.subr.bf16.mxu1 %v4354_v7  ;;  %3814 = vmatpush3.bf16.msra.mxu0 %v4022_v4 }
 0x6a4   : > { %3827 = vmatprep.subr.bf16.mxu0 %v4354_v7 }
 0x6a6   : > { %3822 = vmatpush3.bf16.msra.mxu1 %v4020_v63 }
 0x6a7   : > { %3833 = vmatprep.subr.bf16.mxu1 %v4354_v7 }
 0x6a9   : > { %3824 = vmatmul.mubr.msk.bf16.vlgmr.msra.gmra.mxu1 %vm1117_vm1, %v3629_v11 }
 0x6aa   : > { %3834 = vmatpush3.bf16.xpose.msra.mxu1 %v1744_v2  ;;  %3835 = vmatprep.mubr.msk.bf16.mxu1 %vm4356_vm0, %v4354_v7 }
 0x6ab   : > { %3845 = vmatprep.subr.bf16.mxu1 %v4354_v7 }
 0x6b1   : > { %3836 = vmatmul.mubr.msk.bf16.vlgmr.msra.gmra.mxu1 %vm1117_vm1, %v1737_v3 }
 0x6b2   : > { %3847 = vmatprep.mubr.msk.bf16.mxu1 %vm4356_vm0, %v4354_v7 }
 0x75d   : > { %v1507_v6 = vpop.f32.mrf.mxu0 }
 0x75f   : > { %v3803_v5 = vpop.f32.mrf.mxu0 }
 0x761   : > { %v1510_v8 = vpop.f32.mrf.mxu0  ;;  %v1556_v10 = vpop.f32.mrf.mxu1 }
 0x762   : > { %v3628_v11 = vpack.c.bf16 %v1556_v10, %v1507_v6 }
 0x763   : > { %v3804_v12 = vpop.f32.mrf.mxu0  ;;  %v3809_v13 = vpop.f32.mrf.mxu1 }
 0x764   : > { %3816 = vmatmul.mubr.msk.bf16.vlgmr.msra.gmra.mxu0 %vm1117_vm1, %v3628_v11  ;;  %v4023_v12 = vld [vmem:[%s4647_s14 + $0x28] sm:$0xff]   ;;  %v4024_v13 = vld [vmem:[%s4647_s14 + $0x20] sm:$0xff]  }
 0x765   : > { %3828 = vmatpush3.bf16.xpose.msra.mxu0 %v1694_v14  ;;  %v1559_v15 = vpop.f32.mrf.mxu1  ;;  %3829 = vmatprep.mubr.msk.bf16.mxu0 %vm4356_vm0, %v4354_v7 }
 0x766   : > { %3839 = vmatprep.subr.bf16.mxu0 %v4354_v7 }
 0x767   : > { %v3810_v18 = vpop.f32.mrf.mxu1 }
 0x769   : > { %v4887_v19 = vpop.f32.mrf.mxu1 }
 0x76b   : > { %v3825_v23 = vpop.f32.mrf.mxu1 }
 0x76c   : > { %3830 = vmatmul.mubr.msk.bf16.vlgmr.msra.gmra.mxu0 %vm1117_vm1, %v1687_v21 }
 0x76d   : > { %v4890_v25 = vpop.f32.mrf.mxu1  ;;  %3841 = vmatprep.mubr.msk.bf16.mxu0 %vm4356_vm0, %v4354_v7 }
 0x76f   : > { %v3826_v26 = vpop.f32.mrf.mxu1 }
 0x771   : > { %v1780_v28 = vpop.f32.mrf.mxu1 }
 0x772   : > { %v1787_v29 = vsel %vm4791_vm3, %v1780_v28, -1e+09 }
 0x773   : > { %v3837_v31 = vpop.f32.mrf.mxu1  ;;  %v1791_v32 = vsel %vm1212_vm4, %v1787_v29, -inf }
 0x774   : > { %1792 = vmax.xlane.f32.xlu1 %v1791_v32 }
 0x775   : > { %v1783_v33 = vpop.f32.mrf.mxu1 }
 0x777   : > { %v3838_v34 = vpop.f32.mrf.mxu1 }
 0x785   : > { %1860 = vrot.lane.b32.xlu1 %v4772_v22, %s4358_s24 }
 0x789   : > { %1975 = vrot.lane.b32.xlu1 %v4758_v9, %s4359_s3 }
 0x78d   : > { %2025 = vrot.lane.b32.xlu1 %v4762_v16, %s4359_s3 }
 0x791   : > { %2023 = vrot.lane.b32.xlu1 %v4780_v24, %s4359_s3 }
 0x7fd   : > { %v1793_v35 = vpop.xlane.xlu1 %1792 }
 0x7fe   : > { %v1795_v38 = vsub.f32 %v1787_v29, %v1793_v35 }
 0x800   : > { %v1798_v39 = vmul.f32 1.442695, %v1795_v38 }
 0x801   : > { %v1861_v36 = vpop.permute.xlu1 %1860 }
 0x802   : > { %v1866_v37 = vsel %vm1242_vm2, %v1861_v36, 0  ;;  %4127 = vpow2.f32 %v1798_v39 }
 0x803   : > { %3846 = vmatpush3.bf16.msra.mxu1 %v1866_v37 }
 0x804   : > { %3859 = vmatprep.subr.bf16.mxu1 %v4354_v7 }
 0x805   : > { %v1976_v59 = vpop.permute.xlu1 %1975 }
 0x806   : > { %v1981_v62 = vsel %vm1117_vm1, %v1976_v59, 0 }
 0x809   : > { %v2026_v28 = vpop.permute.xlu1 %2025 }
 0x80a   : > { %v2031_v33 = vsel %vm1117_vm1, %v2026_v28, 0  ;;  %v4179_v28 = vld [vmem:[#allocation2] sm:$0xff] }
 0x80d   : > { %v2024_v36 = vpop.permute.xlu1 %2023 }
 0x80f   : > { %v4128_v45 = vpop.eup %4127 }
 0x810   : > { %v1803_v48 = vsel %vm1212_vm4, %v4128_v45, 0.0 }
 0x824   : > { %v4907_v40 = vpop.f32.mrf.mxu0 }
 0x826   : > { %v3817_v41 = vpop.f32.mrf.mxu0 }
 0x828   : > { %v4909_v9 = vpop.f32.mrf.mxu0 }
 0x82a   : > { %v3818_v42 = vpop.f32.mrf.mxu0 }
 0x82c   : > { %v1730_v16 = vpop.f32.mrf.mxu0 }
 0x82d   : > { %v1786_v24 = vsel %vm4791_vm3, %v1730_v16, -1e+09  ;;  %v1680_v16 = vadd.f32 %v4887_v19, %v4907_v40 }
 0x82e   : > { %v3831_v43 = vpop.f32.mrf.mxu0  ;;  %v1788_v44 = vsel %vm1212_vm4, %v1786_v24, -inf }
 0x82f   : > { %1789 = vmax.xlane.f32.xlu0 %v1788_v44 }
 0x830   : > { %v1733_v46 = vpop.f32.mrf.mxu0 }
 0x832   : > { %v3832_v47 = vpop.f32.mrf.mxu0 }
 0x833   : > { %1804 = vadd.xlane.f32.xlu0 %v1803_v48 }
 0x8b8   : > { %v1790_v49 = vpop.xlane.xlu0 %1789 }
 0x8b9   : > { %v1794_v50 = vsub.f32 %v1786_v24, %v1790_v49 }
 0x8bb   : > { %v1796_v51 = vmul.f32 1.442695, %v1794_v50 }
 0x8bc   : > { %v1805_v52 = vpop.xlane.xlu0 %1804 }
 0x8bd   : > { %4129 = vpow2.f32 %v1796_v51 }
 0x8be   : > { %4131 = vrcp.f32 %v1805_v52 }
 0x8ca   : > { %v4130_v53 = vpop.eup %4129 }
 0x8cb   : > { %v4132_v54 = vpop.eup %4131  ;;  %v1800_v55 = vsel %vm1212_vm4, %v4130_v53, 0.0 }
 0x8cc   : > { %1801 = vadd.xlane.f32.xlu0 %v1800_v55  ;;  %v1809_v56 = vmul.f32 %v4132_v54, %v4128_v45  ;;  %v1683_v45 = vadd.f32 %v4890_v25, %v4909_v9 }
 0x8ce   : > { %v1811_v61 = vpack.c.bf16 %v1809_v56, %v1809_v56 }
 0x8d0   : > { %3848 = vmatmul.mubr.msk.bf16.vlgmr.msra.gmra.mxu1 %vm1212_vm4, %v1811_v61 }
 0x8d1   : > { %3860 = vmatpush3.bf16.xpose.msra.mxu1 %v1981_v62  ;;  %3861 = vmatprep.mubr.msk.bf16.mxu1 %vm4356_vm0, %v4354_v7 }
 0x8d2   : > { %3871 = vmatprep.subr.bf16.mxu1 %v4354_v7 }
 0x8e2   : > { %1812 = vrot.lane.b32.xlu0 %v4765_v17, %s4358_s24 }
 0x8e6   : > { %1973 = vrot.lane.b32.xlu0 %v4769_v20, %s4359_s3 }
 0x955   : > { %v1802_v63 = vpop.xlane.xlu0 %1801 }
 0x956   : > { %4133 = vrcp.f32 %v1802_v63 }
 0x959   : > { %v1813_v1 = vpop.permute.xlu0 %1812 }
 0x95a   : > { %v1818_v2 = vsel %vm1242_vm2, %v1813_v1, 0 }
 0x95b   : > { %3840 = vmatpush3.bf16.msra.mxu0 %v1818_v2 }
 0x95c   : > { %3851 = vmatprep.subr.bf16.mxu0 %v4354_v7 }
 0x95d   : > { %v1974_v3 = vpop.permute.xlu0 %1973 }
 0x95e   : > { %3862 = vmatmul.mubr.msk.bf16.vlgmr.msra.gmra.mxu1 %vm1117_vm1, %v1974_v3 }
 0x95f   : > { %3873 = vmatprep.mubr.msk.bf16.mxu1 %vm4356_vm0, %v4354_v7 }
 0x963   : > { %v4134_v4 = vpop.eup %4133 }
 0x964   : > { %v1808_v6 = vmul.f32 %v4134_v4, %v4130_v53 }
 0x966   : > { %v1810_v5 = vpack.c.bf16 %v1808_v6, %v1808_v6  ;;  %v4025_v6 = vld [vmem:[%s4647_s14 + $0x38] sm:$0xff]  }
 0x968   : > { %3842 = vmatmul.mubr.msk.bf16.vlgmr.msra.gmra.mxu0 %vm1212_vm4, %v1810_v5  ;;  %v4026_v5 = vld [vmem:[%s4647_s14 + $0x30] sm:$0xff]  }
 0x969   : > { %3855 = vmatprep.mubr.msk.bf16.mxu0 %vm4356_vm0, %v4354_v7  ;;  %3852 = vmatpush3.bf16.msra.mxu0 %v4023_v12 }
 0x96a   : > { %3853 = vmatprep.subr.bf16.mxu0 %v4354_v7 }
 0x96d   : > { %3854 = vmatpush3.bf16.msra.mxu0 %v4024_v13 }
 0x96e   : > { %3865 = vmatprep.subr.bf16.mxu0 %v4354_v7 }
 0x990   : > { %v1902_v20 = vpop.f32.mrf.mxu1 }
 0x992   : > { %v3849_v8 = vpop.f32.mrf.mxu1 }
 0x994   : > { %v1905_v10 = vpop.f32.mrf.mxu1 }
 0x996   : > { %v3850_v11 = vpop.f32.mrf.mxu1 }
 0xa1e   : > { %v2017_v14 = vpop.f32.mrf.mxu1 }
 0xa1f   : > { %v2073_v15 = vsel %vm4791_vm3, %v2017_v14, -1e+09 }
 0xa20   : > { %v3863_v18 = vpop.f32.mrf.mxu1  ;;  %v2075_v21 = vsel %vm1212_vm4, %v2073_v15, -inf }
 0xa21   : > { %2076 = vmax.xlane.f32.xlu0 %v2075_v21 }
 0xa22   : > { %v2020_v23 = vpop.f32.mrf.mxu1 }
 0xa24   : > { %v3864_v26 = vpop.f32.mrf.mxu1 }
 0xa25   : > { %v3528_v26 = vld [vmem:[%s5228_s17] ss:$0 sm:$0xff] }
 0xa28   : > { %v1854_v29 = vpop.f32.mrf.mxu0 }
 0xa29   : > { %v3630_v31 = vpack.c.bf16 %v1902_v20, %v1854_v29 }
 0xa2a   : > { %v3843_v32 = vpop.f32.mrf.mxu0 }
 0xa2b   : > { %3856 = vmatmul.mubr.msk.bf16.vlgmr.msra.gmra.mxu0 %vm1117_vm1, %v3630_v31 }
 0xa2c   : > { %3866 = vmatpush3.bf16.xpose.msra.mxu0 %v2031_v33  ;;  %v1857_v34 = vpop.f32.mrf.mxu0  ;;  %3867 = vmatprep.mubr.msk.bf16.mxu0 %vm4356_vm0, %v4354_v7 }
 0xa2d   : > { %3877 = vmatprep.subr.bf16.mxu0 %v4354_v7  ;;  %v4180_v34 = vld [vmem:[#allocation2 + $0x8] sm:$0xff] }
 0xa2e   : > { %v3844_v35 = vpop.f32.mrf.mxu0 }
 0xa33   : > { %3868 = vmatmul.mubr.msk.bf16.vlgmr.msra.gmra.mxu0 %vm1117_vm1, %v2024_v36 }
 0xa34   : > { %3879 = vmatprep.mubr.msk.bf16.mxu0 %vm4356_vm0, %v4354_v7 }
 0xaaa   : > { %v2077_v37 = vpop.xlane.xlu0 %2076 }
 0xaab   : > { %v2081_v38 = vsub.f32 %v2073_v15, %v2077_v37  ;;  %v4027_v37 = vld [vmem:[%s4624_s26 + $0xe0] ss:$16 sps:$4 sm:$0xff]  }
 0xaad   : > { %v2083_v39 = vmul.f32 1.442695, %v2081_v38  ;;  %v4029_v38 = vld [vmem:[%s4624_s26 + $0xe4] ss:$16 sps:$4 sm:$0xff]  }
 0xaaf   : > { %4135 = vpow2.f32 %v2083_v39  ;;  %v4030_v39 = vld [vmem:[%s4624_s26 + $0xe8] ss:$16 sps:$4 sm:$0xff]  }
 0xabc   : > { %v4136_v41 = vpop.eup %4135 }
 0xabd   : > { %v2087_v42 = vsel %vm1212_vm4, %v4136_v41, 0.0 }
 0xabe   : > { %2088 = vadd.xlane.f32.xlu0 %v2087_v42 }
 0xaeb   : > { %v1964_v24 = vpop.f32.mrf.mxu0 }
 0xaec   : > { %v1971_v43 = vadd.f32 %v1964_v24, %v1680_v16 }
 0xaed   : > { %v3857_v44 = vpop.f32.mrf.mxu0 }
 0xaef   : > { %v1967_v46 = vpop.f32.mrf.mxu0 }
 0xaf0   : > { %v1972_v47 = vadd.f32 %v1967_v46, %v1683_v45 }
 0xaf1   : > { %v3858_v48 = vpop.f32.mrf.mxu0 }
 0xaf2   : > { %v4035_v48 = vld [vmem:[%s4624_s26 + $0xc4] ss:$16 sps:$4 sm:$0xff]  }
 0xaf3   : > { %v2067_v49 = vpop.f32.mrf.mxu0 }
 0xaf4   : > { %v2074_v50 = vsel %vm4791_vm3, %v2067_v49, -1e+09  ;;  %v4038_v49 = vld [vmem:[%s4624_s26 + $0xcc] ss:$16 sps:$4 sm:$0xff]  }
 0xaf5   : > { %v3869_v51 = vpop.f32.mrf.mxu0  ;;  %v2078_v52 = vsel %vm1212_vm4, %v2074_v50, -inf }
 0xaf6   : > { %2079 = vmax.xlane.f32.xlu1 %v2078_v52  ;;  %v4036_v51 = vld [vmem:[%s4624_s26 + $0xc8] ss:$16 sps:$4 sm:$0xff]   ;;  %v4041_v52 = vld [vmem:[%s4624_s26 + $0xa4] ss:$16 sps:$4 sm:$0xff]  }
 0xaf7   : > { %v2070_v53 = vpop.f32.mrf.mxu0 }
 0xaf8   : > { %v4044_v53 = vld [vmem:[%s4624_s26 + $0xac] ss:$16 sps:$4 sm:$0xff]  }
 0xaf9   : > { %v3870_v54 = vpop.f32.mrf.mxu0 }
 0xafa   : > { %v4039_v54 = vld [vmem:[%s4624_s26 + $0xa0] ss:$16 sps:$4 sm:$0xff]  }
 0xb07   : > { %2147 = vrot.lane.b32.xlu1 %v4772_v22, %s4359_s3 }
 0xb47   : > { %v2089_v59 = vpop.xlane.xlu0 %2088 }
 0xb7f   : > { %v2080_v19 = vpop.xlane.xlu1 %2079 }
 0xb80   : > { %v2082_v40 = vsub.f32 %v2074_v50, %v2080_v19  ;;  %v4033_v50 = vld [vmem:[%s4624_s26 + $0xc0] ss:$16 sps:$4 sm:$0xff]   ;;  %v4042_v19 = vld [vmem:[%s4624_s26 + $0xa8] ss:$16 sps:$4 sm:$0xff]  }
 0xb82   : > { %v2085_v55 = vmul.f32 1.442695, %v2082_v40  ;;  %v4047_v40 = vld [vmem:[%s4624_s26 + $0x84] ss:$16 sps:$4 sm:$0xff]  }
 0xb83   : > { %v2148_v25 = vpop.permute.xlu1 %2147 }
 0xb84   : > { %4137 = vpow2.f32 %v2085_v55  ;;  %v2153_v9 = vsel %vm1242_vm2, %v2148_v25, 0  ;;  %v4045_v55 = vld [vmem:[%s4624_s26 + $0x80] ss:$16 sps:$4 sm:$0xff]   ;;  %v4048_v25 = vld [vmem:[%s4624_s26 + $0x88] ss:$16 sps:$4 sm:$0xff]  }
 0xb85   : > { %3878 = vmatpush3.bf16.msra.mxu0 %v2153_v9  ;;  %4139 = vrcp.f32 %v2089_v59  ;;  %v4050_v9 = vld [vmem:[%s4624_s26 + $0x8c] ss:$16 sps:$4 sm:$0xff]   ;;  %v4051_v59 = vld [vmem:[%s4624_s26 + $0x60] ss:$16 sps:$4 sm:$0xff]  }
 0xb86   : > { %2533 = vmatprep.subr.bf16.mxu0 %v4029_v38  ;;  %v4077_v38 = vld [vmem:[%s4676_s2 + $0x38] sm:$0xff]  }
 0xb91   : > { %v4138_v56 = vpop.eup %4137 }
 0xb92   : > { %v2090_v27 = vsel %vm1212_vm4, %v4138_v56, 0.0  ;;  %v4140_v61 = vpop.eup %4139 }
 0xb93   : > { %2091 = vadd.xlane.f32.xlu0 %v2090_v27  ;;  %v2095_v62 = vmul.f32 %v4140_v61, %v4136_v41  ;;  %v4032_v41 = vld [vmem:[%s4624_s26 + $0xec] ss:$16 sps:$4 sm:$0xff]   ;;  %v4054_v61 = vld [vmem:[%s4624_s26 + $0x68] ss:$16 sps:$4 sm:$0xff]  }
 0xb94   : > { %v4056_v27 = vld [vmem:[%s4624_s26 + $0x6c] ss:$16 sps:$4 sm:$0xff]  }
 0xb95   : > { %v2097_v2 = vpack.c.bf16 %v2095_v62, %v2095_v62  ;;  %v4062_v62 = vld [vmem:[%s4624_s26 + $0x4c] ss:$16 sps:$4 sm:$0xff]  }
 0xba9   : > { %2099 = vrot.lane.b32.xlu0 %v4765_v17, %s4359_s3 }
 0xc1c   : > { %v2092_v22 = vpop.xlane.xlu0 %2091 }
 0xc1d   : > { %4141 = vrcp.f32 %v2092_v22  ;;  %v4059_v22 = vld [vmem:[%s4624_s26 + $0x44] ss:$16 sps:$4 sm:$0xff]  }
 0xc20   : > { %v2100_v63 = vpop.permute.xlu0 %2099 }
 0xc21   : > { %v2105_v1 = vsel %vm1242_vm2, %v2100_v63, 0  ;;  %v4057_v63 = vld [vmem:[%s4624_s26 + $0x40] ss:$16 sps:$4 sm:$0xff]  }
 0xc22   : > { %3872 = vmatpush3.bf16.msra.mxu1 %v2105_v1  ;;  %v4060_v1 = vld [vmem:[%s4624_s26 + $0x48] ss:$16 sps:$4 sm:$0xff]  }
 0xc23   : > { %3883 = vmatprep.subr.bf16.mxu1 %v4354_v7 }
 0xc25   : > { %3874 = vmatmul.mubr.msk.bf16.vlgmr.msra.gmra.mxu1 %vm1212_vm4, %v2097_v2  ;;  %v4065_v2 = vld [vmem:[%s4624_s26 + $0x24] ss:$16 sps:$4 sm:$0xff]  }
 0xc26   : > { %3887 = vmatprep.mubr.msk.bf16.mxu1 %vm4356_vm0, %v4354_v7  ;;  %3884 = vmatpush3.bf16.msra.mxu1 %v4025_v6  ;;  %v4071_v6 = vld [vmem:[%s4624_s26 + $0x4] ss:$16 sps:$4 sm:$0xff]  }
 0xc27   : > { %3885 = vmatprep.subr.bf16.mxu1 %v4354_v7 }
 0xc2a   : > { %v4142_v17 = vpop.eup %4141  ;;  %3886 = vmatpush3.bf16.msra.mxu1 %v4026_v5  ;;  %v4074_v5 = vld [vmem:[%s4624_s26 + $0xc] ss:$16 sps:$4 sm:$0xff]  }
 0xc2b   : > { %v2096_v3 = vmul.f32 %v4142_v17, %v4138_v56  ;;  %2576 = vmatprep.subr.bf16.mxu1 %v4032_v41  ;;  %v4053_v56 = vld [vmem:[%s4624_s26 + $0x64] ss:$16 sps:$4 sm:$0xff]   ;;  %v4068_v17 = vld [vmem:[%s4624_s26 + $0x2c] ss:$16 sps:$4 sm:$0xff]  }
 0xc2c   : > { %v4079_v41 = vld [vmem:[%s4676_s2 + $0x70] sm:$0xff]  }
 0xc2d   : > { %v2098_v4 = vpack.c.bf16 %v2096_v3, %v2096_v3  ;;  %v4063_v3 = vld [vmem:[%s4624_s26 + $0x20] ss:$16 sps:$4 sm:$0xff]  }
 0xc2f   : > { %3880 = vmatmul.mubr.msk.bf16.vlgmr.msra.gmra.mxu0 %vm1212_vm4, %v2098_v4  ;;  %v4066_v4 = vld [vmem:[%s4624_s26 + $0x28] ss:$16 sps:$4 sm:$0xff]  }
 0xc30   : > { %2565 = vmatprep.mubr.bf16.mxu0 %v4355_v30  ;;  %2534 = vmatpush1.bf16.msra.mxu0 %v4027_v37  ;;  %v4076_v37 = vld [vmem:[%s4676_s2 + $0xf8] sm:$0xff]  }
 0xc31   : > { %2535 = vmatprep.subr.bf16.mxu0 %v4035_v48  ;;  %v4088_v48 = vld [vmem:[%s4676_s2 + $0xe0] sm:$0xff]  }
 0xc34   : > { %2536 = vmatpush1.bf16.msra.mxu0 %v4033_v50  ;;  %v4090_v50 = vld [vmem:[%s4676_s2 + $0xa0] sm:$0xff]  }
 0xc35   : > { %2537 = vmatprep.subr.bf16.mxu0 %v4041_v52  ;;  %v4092_v52 = vld [vmem:[%s4676_s2 + $0xd8] sm:$0xff]  }
 0xc38   : > { %2538 = vmatpush1.bf16.msra.mxu0 %v4039_v54  ;;  %v4094_v54 = vld [vmem:[%s4676_s2 + $0x98] sm:$0xff]  }
 0xc39   : > { %2539 = vmatprep.subr.bf16.mxu0 %v4047_v40  ;;  %v4096_v40 = vld [vmem:[%s4676_s2 + $0xd0] sm:$0xff]  }
 0xc3c   : > { %2540 = vmatpush1.bf16.msra.mxu0 %v4045_v55  ;;  %v4097_v55 = vld [vmem:[%s4676_s2 + $0x10] sm:$0xff]  }
 0xc3d   : > { %2541 = vmatprep.subr.bf16.mxu0 %v4053_v56  ;;  %v4100_v56 = vld [vmem:[%s4676_s2 + $0xc8] sm:$0xff]  }
 0xc40   : > { %2542 = vmatpush1.bf16.msra.mxu0 %v4051_v59  ;;  %v4102_v59 = vld [vmem:[%s4676_s2 + $0x88] sm:$0xff]  }
 0xc41   : > { %2543 = vmatprep.subr.bf16.mxu0 %v4059_v22  ;;  %v4104_v22 = vld [vmem:[%s4676_s2 + $0xc0] sm:$0xff]  }
 0xc44   : > { %2544 = vmatpush1.bf16.msra.mxu0 %v4057_v63  ;;  %v4106_v63 = vld [vmem:[%s4676_s2 + $0x80] sm:$0xff]  }
 0xc45   : > { %2545 = vmatprep.subr.bf16.mxu0 %v4065_v2  ;;  %v2361_v2 = vsub.s32 3, %v4746_v57 }
 0xc48   : > { %2546 = vmatpush1.bf16.msra.mxu0 %v4063_v3 }
 0xc49   : > { %2547 = vmatprep.subr.bf16.mxu0 %v4071_v6 }
 0xce5   : > { %v2141_v20 = vpop.f32.mrf.mxu1 }
 0xce7   : > { %v3875_v8 = vpop.f32.mrf.mxu1 }
 0xce8   : > { %v4072_v8 = vld [vmem:[%s4624_s26 + $0x8] ss:$16 sps:$4 sm:$0xff]  }
 0xce9   : > { %v2144_v10 = vpop.f32.mrf.mxu1 }
 0xceb   : > { %v3876_v11 = vpop.f32.mrf.mxu1 }
 0xcef   : > { %v2189_v12 = vpop.f32.mrf.mxu0 }
 0xcf0   : > { %v3631_v13 = vpack.c.bf16 %v2189_v12, %v2141_v20  ;;  %v4069_v20 = vld [vmem:[%s4624_s26] ss:$16 sps:$4 sm:$0xff]  }
 0xcf1   : > { %v3881_v14 = vpop.f32.mrf.mxu0  ;;  %2548 = vmatpush1.bf16.msra.mxu0 %v4069_v20 }
 0xcf2   : > { %3888 = vmatmul.mubr.msk.bf16.vlgmr.msra.gmra.mxu1 %vm1117_vm1, %v3631_v13 }
 0xcf3   : > { %v2192_v15 = vpop.f32.mrf.mxu0  ;;  %2608 = vmatprep.mubr.bf16.mxu1 %v4355_v30  ;;  %2577 = vmatpush1.bf16.msra.mxu1 %v4030_v39  ;;  %v4078_v39 = vld [vmem:[%s4676_s2 + $0xb8] sm:$0xff]  }
 0xcf4   : > { %2578 = vmatprep.subr.bf16.mxu1 %v4038_v49  ;;  %v4089_v49 = vld [vmem:[%s4676_s2 + $0x20] sm:$0xff]  }
 0xcf5   : > { %v3882_v18 = vpop.f32.mrf.mxu0 }
 0xcf7   : > { %2579 = vmatpush1.bf16.msra.mxu1 %v4036_v51  ;;  %v4091_v51 = vld [vmem:[%s4676_s2 + $0x58] sm:$0xff]  }
 0xcf8   : > { %2580 = vmatprep.subr.bf16.mxu1 %v4044_v53  ;;  %v4093_v53 = vld [vmem:[%s4676_s2 + $0x18] sm:$0xff]  }
 0xcfb   : > { %2581 = vmatpush1.bf16.msra.mxu1 %v4042_v19  ;;  %v4095_v19 = vld [vmem:[%s4676_s2 + $0x50] sm:$0xff]  }
 0xcfc   : > { %2582 = vmatprep.subr.bf16.mxu1 %v4050_v9  ;;  %v4099_v9 = vld [vmem:[%s4676_s2 + $0x48] sm:$0xff]  }
 0xcff   : > { %2583 = vmatpush1.bf16.msra.mxu1 %v4048_v25  ;;  %v4098_v25 = vld [vmem:[%s4676_s2 + $0x90] sm:$0xff]  }
 0xd00   : > { %2584 = vmatprep.subr.bf16.mxu1 %v4056_v27  ;;  %v4101_v27 = vld [vmem:[%s4676_s2 + $0x8] sm:$0xff]  }
 0xd03   : > { %2585 = vmatpush1.bf16.msra.mxu1 %v4054_v61  ;;  %v4103_v61 = vld [vmem:[%s4676_s2 + $0x40] sm:$0xff]  }
 0xd04   : > { %2586 = vmatprep.subr.bf16.mxu1 %v4062_v62  ;;  %v4105_v62 = vld [vmem:[%s4676_s2] sm:$0xff]  }
 0xd07   : > { %2587 = vmatpush1.bf16.msra.mxu1 %v4060_v1  ;;  %v2345_v1 = vld [vmem:[%s4670_s15] sm:$0xf] }
 0xd08   : > { %2588 = vmatprep.subr.bf16.mxu1 %v4068_v17  ;;  %v2350_v17 = vrot.slane %v2345_v1, %v861_v0  ;;  %v2358_v3 = vrot.slane %v2345_v1, %v869_v60  ;;  %v2362_v6 = vrot.slane %v2345_v1, %v2361_v2 }
 0xd0b   : > { %2589 = vmatpush1.bf16.msra.mxu1 %v4066_v4  ;;  %v2354_v4 = vrot.slane %v2345_v1, %v865_v58 }
 0xd0c   : > { %2590 = vmatprep.subr.bf16.mxu1 %v4074_v5 }
 0xd0f   : > { %2591 = vmatpush1.bf16.msra.mxu1 %v4072_v8 }
 0xd10   : > { %3712 = vmatprep.subr.bf16.mxu1 %v4076_v37 }
 0xdb2   : > { %v2251_v21 = vpop.f32.mrf.mxu1 }
 0xdb3   : > { %v2258_v7 = vadd.f32 %v2251_v21, %v1971_v43 }
 0xdb4   : > { %v3889_v23 = vpop.f32.mrf.mxu1 }
 0xdb5   : > { %v2260_v29 = vadd.f32 %v4179_v28, %v2258_v7  ;;  %v3529_v7 = vld [vmem:[%s759_s19] ss:$0 sm:$0xff] }
 0xdb6   : > { %v2254_v31 = vpop.f32.mrf.mxu1 }
 0xdb7   : > { %v2259_v32 = vadd.f32 %v2254_v31, %v1972_v47  ;;  %v4979_v33 = vadd.f32 %v3528_v26, %v2260_v29  ;;  %v3530_v29 = vld [vmem:[%s762_s7] ss:$0 sm:$0xff] }
 0xdb8   : > { %v3890_v30 = vpop.f32.mrf.mxu1 }
 0xdb9   : > { %v2261_v35 = vadd.f32 %v4180_v34, %v2259_v32  ;;  %2273 = vadd.xlane.f32.xlu1 %v4979_v33 }
 0xdbb   : > { %v4982_v36 = vadd.f32 %v3528_v26, %v2261_v35  ;;  %v4075_v35 = vld [vmem:[%s4676_s2 + $0x78] sm:$0xff]  }
 0xdbc   : > { %3690 = vmatprep.subr.bf16.mxu0 %v4075_v35 }
 0xdbd   : > { %2275 = vadd.xlane.f32.xlu0 %v4982_v36 }
 0xe42   : > { %v2274_v42 = vpop.xlane.xlu1 %2273 }
 0xe43   : > { %v2277_v16 = vmul.f32 0.0078125, %v2274_v42  ;;  %v4080_v42 = vld [vmem:[%s4676_s2 + $0xf0] sm:$0xff]  }
 0xe45   : > { %v4990_v24 = vsub.f32 %v4979_v33, %v2277_v16  ;;  %v4081_v16 = vld [vmem:[%s4676_s2 + $0x30] sm:$0xff]  }
 0xe46   : > { %v2276_v43 = vpop.xlane.xlu0 %2275 }
 0xe47   : > { %v2278_v44 = vmul.f32 0.0078125, %v2276_v43  ;;  %v2281_v45 = vmul.f32 %v4990_v24, %v4990_v24  ;;  %v4083_v43 = vld [vmem:[%s4676_s2 + $0x68] sm:$0xff]  }
 0xe49   : > { %v4995_v46 = vsub.f32 %v4982_v36, %v2278_v44  ;;  %2283 = vadd.xlane.f32.xlu0 %v2281_v45  ;;  %v4084_v44 = vld [vmem:[%s4676_s2 + $0xe8] sm:$0xff]  }
 0xe4a   : > { %v4085_v45 = vld [vmem:[%s4676_s2 + $0x28] sm:$0xff]  }
 0xe4b   : > { %v2282_v47 = vmul.f32 %v4995_v46, %v4995_v46 }
 0xe4d   : > { %2285 = vadd.xlane.f32.xlu1 %v2282_v47  ;;  %v4087_v47 = vld [vmem:[%s4676_s2 + $0x60] sm:$0xff]  }
 0xed2   : > { %v2284_v10 = vpop.xlane.xlu0 %2283 }
 0xed3   : > { %v2287_v11 = vmul.f32 0.0078125, %v2284_v10 }
 0xed5   : > { %v2289_v12 = vadd.f32 1e-05, %v2287_v11 }
 0xed6   : > { %v2286_v13 = vpop.xlane.xlu1 %2285 }
 0xed7   : > { %4143 = vrsqrt.f32 %v2289_v12  ;;  %v2288_v14 = vmul.f32 0.0078125, %v2286_v13 }
 0xed9   : > { %v2290_v15 = vadd.f32 1e-05, %v2288_v14 }
 0xedb   : > { %4145 = vrsqrt.f32 %v2290_v15 }
 0xee4   : > { %v4144_v18 = vpop.eup %4143 }
 0xee5   : > { %v2293_v21 = vmul.f32 %v4144_v18, %v4990_v24  ;;  %v4082_v24 = vld [vmem:[%s4676_s2 + $0xb0] sm:$0xff]  }
 0xee7   : > { %v2301_v28 = vmul.f32 %v3529_v7, %v2293_v21 }
 0xee8   : > { %v4146_v23 = vpop.eup %4145 }
 0xee9   : > { %v2294_v26 = vmul.f32 %v4146_v23, %v4995_v46  ;;  %v2309_v32 = vadd.f32 %v3530_v29, %v2301_v28  ;;  %v4086_v46 = vld [vmem:[%s4676_s2 + $0xa8] sm:$0xff]   ;;  %s5230_s2 = sld [smem:[#allocation17_spill]] (!%p3609_p5) }
 0xeeb   : > { %v2302_v31 = vmul.f32 %v3529_v7, %v2294_v26 }
 0xeed   : > { %v2310_v30 = vadd.f32 %v3530_v29, %v2302_v31 }
 0xeef   : > { %v3632_v34 = vpack.c.bf16 %v2310_v30, %v2309_v32 }
 0xef1   : > { %2566 = vmatmul.mubr.bf16.vlgmr.msra.gmra.mxu0 %v3632_v34  ;;  %2609 = vmatmul.mubr.bf16.vlgmr.msra.gmra.mxu1 %v3632_v34 }
 0xef2   : > { %3691 = vmatpush3.bf16.msra.mxu0 %v4077_v38  ;;  %3713 = vmatpush3.bf16.msra.mxu1 %v4078_v39 }
 0xef3   : > { %3692 = vmatprep.subr.bf16.mxu0 %v4079_v41  ;;  %3714 = vmatprep.subr.bf16.mxu1 %v4080_v42 }
 0xef6   : > { %3693 = vmatpush3.bf16.msra.mxu0 %v4081_v16  ;;  %3715 = vmatpush3.bf16.msra.mxu1 %v4082_v24 }
 0xef7   : > { %3694 = vmatprep.subr.bf16.mxu0 %v4083_v43  ;;  %3716 = vmatprep.subr.bf16.mxu1 %v4084_v44 }
 0xefa   : > { %3695 = vmatpush3.bf16.msra.mxu0 %v4085_v45  ;;  %3717 = vmatpush3.bf16.msra.mxu1 %v4086_v46 }
 0xefb   : > { %3696 = vmatprep.subr.bf16.mxu0 %v4087_v47  ;;  %3718 = vmatprep.subr.bf16.mxu1 %v4088_v48 }
 0xefe   : > { %3697 = vmatpush3.bf16.msra.mxu0 %v4089_v49  ;;  %3719 = vmatpush3.bf16.msra.mxu1 %v4090_v50 }
 0xeff   : > { %3698 = vmatprep.subr.bf16.mxu0 %v4091_v51  ;;  %3720 = vmatprep.subr.bf16.mxu1 %v4092_v52 }
 0xf02   : > { %3699 = vmatpush3.bf16.msra.mxu0 %v4093_v53  ;;  %3721 = vmatpush3.bf16.msra.mxu1 %v4094_v54 }
 0xf03   : > { %3700 = vmatprep.subr.bf16.mxu0 %v4095_v19  ;;  %3722 = vmatprep.subr.bf16.mxu1 %v4096_v40 }
 0xf06   : > { %3701 = vmatpush3.bf16.msra.mxu0 %v4097_v55  ;;  %3723 = vmatpush3.bf16.msra.mxu1 %v4098_v25 }
 0xf07   : > { %3702 = vmatprep.subr.bf16.mxu0 %v4099_v9  ;;  %3724 = vmatprep.subr.bf16.mxu1 %v4100_v56 }
 0xf0a   : > { %3703 = vmatpush3.bf16.msra.mxu0 %v4101_v27  ;;  %3725 = vmatpush3.bf16.msra.mxu1 %v4102_v59 }
 0xf0b   : > { %3704 = vmatprep.subr.bf16.mxu0 %v4103_v61  ;;  %3726 = vmatprep.subr.bf16.mxu1 %v4104_v22 }
 0xf0e   : > { %3705 = vmatpush3.bf16.msra.mxu0 %v4105_v62  ;;  %3727 = vmatpush3.bf16.msra.mxu1 %v4106_v63 }
 0xfb1   : > { %v2567_v5 = vpop.f32.mrf.mxu0  ;;  %v2610_v20 = vpop.f32.mrf.mxu1 }
 0xfb2   : > { %v5079_v8 = vadd.f32 %v2567_v5, %v2350_v17  ;;  %v5081_v10 = vadd.f32 %v2610_v20, %v2358_v3 }
 0xfb3   : > { %v2569_v11 = vpop.f32.mrf.mxu0  ;;  %v2612_v12 = vpop.f32.mrf.mxu1 }
 0xfb4   : > { %v3564_v13 = vmul.f32 -1.702, %v5079_v8  ;;  %v3566_v14 = vmul.f32 -1.702, %v5081_v10  ;;  %v5085_v0 = vadd.f32 %v2569_v11, %v2354_v4  ;;  %v5087_v15 = vadd.f32 %v2612_v12, %v2362_v6 }
 0xfb5   : > { %v2571_v60 = vpop.f32.mrf.mxu0  ;;  %v2614_v57 = vpop.f32.mrf.mxu1 }
 0xfb6   : > { %v2635_v58 = vmul.f32 1.442695, %v3564_v13  ;;  %v2639_v18 = vmul.f32 1.442695, %v3566_v14  ;;  %v3565_v21 = vmul.f32 -1.702, %v5085_v0  ;;  %v2572_v7 = vadd.f32 %v2571_v60, %v2350_v17 }
 0xfb7   : > { %v3567_v23 = vmul.f32 -1.702, %v5087_v15  ;;  %v2615_v26 = vadd.f32 %v2614_v57, %v2358_v3  ;;  %v2573_v28 = vpop.f32.mrf.mxu0  ;;  %v2616_v29 = vpop.f32.mrf.mxu1 }
 0xfb8   : > { %4147 = vpow2.f32 %v2635_v58  ;;  %v2637_v31 = vmul.f32 1.442695, %v3565_v21  ;;  %v3568_v32 = vmul.f32 -1.702, %v2572_v7  ;;  %v2574_v30 = vadd.f32 %v2573_v28, %v2354_v4 }
 0xfb9   : > { %4149 = vpow2.f32 %v2639_v18  ;;  %v2641_v34 = vmul.f32 1.442695, %v3567_v23  ;;  %v3570_v35 = vmul.f32 -1.702, %v2615_v26  ;;  %v2617_v37 = vadd.f32 %v2616_v29, %v2362_v6 }
 0xfba   : > { %4151 = vpow2.f32 %v2637_v31  ;;  %v2643_v38 = vmul.f32 1.442695, %v3568_v32  ;;  %v3569_v39 = vmul.f32 -1.702, %v2574_v30 }
 0xfbb   : > { %4153 = vpow2.f32 %v2641_v34  ;;  %v2647_v41 = vmul.f32 1.442695, %v3570_v35  ;;  %v3571_v42 = vmul.f32 -1.702, %v2617_v37 }
 0xfbc   : > { %4155 = vpow2.f32 %v2643_v38  ;;  %v2645_v16 = vmul.f32 1.442695, %v3569_v39 }
 0xfbd   : > { %4157 = vpow2.f32 %v2647_v41  ;;  %v2649_v24 = vmul.f32 1.442695, %v3571_v42 }
 0xfbe   : > { %4159 = vpow2.f32 %v2645_v16 }
 0xfbf   : > { %4161 = vpow2.f32 %v2649_v24 }
 0xfc5   : > { %v4148_v43 = vpop.eup %4147 }
 0xfc6   : > { %v4150_v44 = vpop.eup %4149  ;;  %v2651_v45 = vadd.f32 1.0, %v4148_v43 }
 0xfc7   : > { %v4152_v46 = vpop.eup %4151  ;;  %v2653_v47 = vadd.f32 1.0, %v4150_v44 }
 0xfc8   : > { %v4154_v48 = vpop.eup %4153  ;;  %4163 = vrcp.f32 %v2651_v45  ;;  %v2652_v49 = vadd.f32 1.0, %v4152_v46 }
 0xfc9   : > { %v4156_v50 = vpop.eup %4155  ;;  %4165 = vrcp.f32 %v2653_v47  ;;  %v2654_v51 = vadd.f32 1.0, %v4154_v48 }
 0xfca   : > { %v4158_v52 = vpop.eup %4157  ;;  %4167 = vrcp.f32 %v2652_v49  ;;  %v2655_v53 = vadd.f32 1.0, %v4156_v50 }
 0xfcb   : > { %v4160_v54 = vpop.eup %4159  ;;  %4169 = vrcp.f32 %v2654_v51  ;;  %v2657_v19 = vadd.f32 1.0, %v4158_v52 }
 0xfcc   : > { %v4162_v40 = vpop.eup %4161  ;;  %4171 = vrcp.f32 %v2655_v53  ;;  %v2656_v55 = vadd.f32 1.0, %v4160_v54 }
 0xfcd   : > { %4173 = vrcp.f32 %v2657_v19  ;;  %v2658_v25 = vadd.f32 1.0, %v4162_v40 }
 0xfce   : > { %4175 = vrcp.f32 %v2656_v55 }
 0xfcf   : > { %4177 = vrcp.f32 %v2658_v25 }
 0xfd5   : > { %v4164_v9 = vpop.eup %4163 }
 0xfd6   : > { %v4166_v56 = vpop.eup %4165  ;;  %v2675_v4 = vmul.f32 %v4164_v9, %v5079_v8  ;;  %v3572_v8 = vld [vmem:[%s769_s29] ss:$0 sm:$0xff] }
 0xfd7   : > { %v4168_v27 = vpop.eup %4167  ;;  %v2677_v20 = vmul.f32 %v4166_v56, %v5081_v10 }
 0xfd8   : > { %v4170_v59 = vpop.eup %4169  ;;  %v2676_v2 = vmul.f32 %v4168_v27, %v5085_v0 }
 0xfd9   : > { %v4172_v61 = vpop.eup %4171  ;;  %v2678_v6 = vmul.f32 %v4170_v59, %v5087_v15 }
 0xfda   : > { %v4174_v22 = vpop.eup %4173  ;;  %v2679_v63 = vmul.f32 %v4172_v61, %v2572_v7 }
 0xfdb   : > { %v4176_v62 = vpop.eup %4175  ;;  %v2681_v17 = vmul.f32 %v4174_v22, %v2615_v26 }
 0xfdc   : > { %v4178_v1 = vpop.eup %4177  ;;  %v2680_v3 = vmul.f32 %v4176_v62, %v2574_v30  ;;  %v3633_v12 = vpack.c.bf16 %v2679_v63, %v2675_v4 }
 0xfdd   : > { %v2682_v5 = vmul.f32 %v4178_v1, %v2617_v37  ;;  %v3635_v14 = vpack.c.bf16 %v2681_v17, %v2677_v20 }
 0xfde   : > { %v3634_v11 = vpack.c.bf16 %v2680_v3, %v2676_v2 }
 0xfdf   : > { %v3636_v13 = vpack.c.bf16 %v2682_v5, %v2678_v6 }
 0xfe0   : > { %3010 = vmatprep.mubr.bf16.mxu0 %v3634_v11 }
 0xfe1   : > { %3051 = vmatprep.mubr.bf16.mxu1 %v3636_v13  ;;  %3011 = vmatmul.mubr.bf16.vlgmr.msra.gmra.mxu0 %v3633_v12 }
 0xfe2   : > { %3052 = vmatmul.mubr.bf16.vlgmr.msra.gmra.mxu1 %v3635_v14 }
0x10a1   : > { %v3706_v60 = vpop.f32.mrf.mxu0 }
0x10a2   : > { %v3728_v0 = vpop.f32.mrf.mxu1 }
0x10a3   : > { %v3707_v57 = vpop.f32.mrf.mxu0 }
0x10a4   : > { %v3708_v15 = vadd.f32 %v3707_v57, %v3706_v60  ;;  %v3729_v58 = vpop.f32.mrf.mxu1 }
0x10a5   : > { %v3709_v18 = vpop.f32.mrf.mxu0  ;;  %v3730_v21 = vadd.f32 %v3729_v58, %v3728_v0 }
0x10a6   : > { %v3013_v10 = vadd.f32 %v3708_v15, %v3572_v8  ;;  %v3731_v7 = vpop.f32.mrf.mxu1 }
0x10a7   : > { %v3710_v23 = vpop.f32.mrf.mxu0 }
0x10a8   : > { %v3054_v26 = vadd.f32 %v3730_v21, %v3013_v10  ;;  %v3711_v28 = vadd.f32 %v3710_v23, %v3709_v18  ;;  %v3732_v29 = vpop.f32.mrf.mxu1 }
0x10a9   : > { %v3733_v30 = vadd.f32 %v3732_v29, %v3731_v7 }
0x10aa   : > { %v3060_v31 = vadd.f32 %v3054_v26, %v4979_v33  ;;  %v3016_v32 = vadd.f32 %v3711_v28, %v3572_v8 }
0x10ac   : > { %3062 = vst [vmem:[#allocation2] sm:$0xff] %v3060_v31  ;;  %v3057_v34 = vadd.f32 %v3733_v30, %v3016_v32  ;;  %3067 = sbr.rel (%p3609_p5) target bundleno = 4941 (0x134d), region = 108 }
0x10ae   : > { %v3061_v35 = vadd.f32 %v3057_v34, %v4982_v36 }
0x10b0   : > { %3063 = vst [vmem:[#allocation2 + $0x8] sm:$0xff] %v3061_v35 }
0x10b1   : > { %v3068_v37 = vld [vmem:[%s5230_s2] sm:$0xff]  ;;  %v4360_v38 = vmov 0   ;;  %v3069_v33 = vld [vmem:[%s5230_s2 + $0x8] sm:$0xff]  ;;  %vm3098_vm5 = vcmask 1041409   ;;  %vm3101_vm6 = vcmask 1041408   ;;  %v4182_v62 = vld [vmem:[%s5231_s30 + $0x38] sm:$0xff]  }
0x10b2   : > { %4181 = vset.pattern.permute.xlu0 %v4360_v38  ;;  %v4361_v63 = vmov 0.0   ;;  %v4183_v1 = vld [vmem:[%s5231_s30 + $0x30] sm:$0xff]   ;;  %v4184_v2 = vld [vmem:[%s5231_s30 + $0x28] sm:$0xff]   ;;  %v4185_v17 = vld [vmem:[%s5231_s30 + $0x20] sm:$0xff]   ;;  %vm4362_vm7 = vmmov 0  }
0x10b3   : > { %3072 = vperm.xlu0 %4181, %v3068_v37   ;;  %3891 = vmatprep.subr.bf16.mxu0 %v4361_v63  ;;  %v4186_v3 = vld [vmem:[%s5231_s30 + $0x18] sm:$0xff]   ;;  %v4187_v4 = vld [vmem:[%s5231_s30 + $0x10] sm:$0xff]   ;;  %v4188_v6 = vld [vmem:[%s5231_s30 + $0x8] sm:$0xff]  }
0x10b4   : > { %3892 = vmatpush3.bf16.msra.mxu0 %v4182_v62  ;;  %3907 = vmatprep.mubr.msk.bf16.mxu0 %vm4362_vm7, %v4361_v63  ;;  %v4189_v5 = vld [vmem:[%s5231_s30] sm:$0xff]  }
0x10b5   : > { %3893 = vmatprep.subr.bf16.mxu0 %v4361_v63  ;;  %v3610_v14 = vld [vmem:[%s5232_s9] ss:$0 sm:$0xff] }
0x10b6   : > { %v3611_v8 = vld [vmem:[%s5233_s27] ss:$0 sm:$0xff] }
0x10b7   : > { %3077 = vperm.xlu0 %4181, %v3069_v33  }
0x10b8   : > { %3894 = vmatpush3.bf16.msra.mxu0 %v4183_v1 }
0x10b9   : > { %3895 = vmatprep.subr.bf16.mxu0 %v4361_v63 }
0x10bc   : > { %3896 = vmatpush3.bf16.msra.mxu0 %v4184_v2 }
0x10bd   : > { %3897 = vmatprep.subr.bf16.mxu0 %v4361_v63 }
0x10c0   : > { %3898 = vmatpush3.bf16.msra.mxu0 %v4185_v17 }
0x10c1   : > { %3899 = vmatprep.subr.bf16.mxu0 %v4361_v63 }
0x10c4   : > { %3900 = vmatpush3.bf16.msra.mxu0 %v4186_v3 }
0x10c5   : > { %3901 = vmatprep.subr.bf16.mxu0 %v4361_v63 }
0x10c8   : > { %3902 = vmatpush3.bf16.msra.mxu0 %v4187_v4 }
0x10c9   : > { %3903 = vmatprep.subr.bf16.mxu0 %v4361_v63 }
0x10cc   : > { %3904 = vmatpush3.bf16.msra.mxu0 %v4188_v6 }
0x10cd   : > { %3905 = vmatprep.subr.bf16.mxu0 %v4361_v63 }
0x10d0   : > { %3906 = vmatpush3.bf16.msra.mxu0 %v4189_v5 }
0x112e   : > { %v3073_v39 = vpop.permute.xlu0 %3072 }
0x112f   : > { %v3080_v41 = vmul.f32 %v3073_v39, %v3060_v31 }
0x1131   : > { %v3082_v42 = vrot.slane %v3080_v41, 4 }
0x1132   : > { %v3078_v36 = vpop.permute.xlu0 %3077 }
0x1133   : > { %v3083_v16 = vadd.f32 %v3082_v42, %v3080_v41  ;;  %v3081_v24 = vmul.f32 %v3078_v36, %v3061_v35 }
0x1135   : > { %v3084_v43 = vrot.slane %v3083_v16, 2  ;;  %v3088_v44 = vrot.slane %v3081_v24, 4 }
0x1137   : > { %v3085_v45 = vadd.f32 %v3084_v43, %v3083_v16  ;;  %v3089_v46 = vadd.f32 %v3088_v44, %v3081_v24 }
0x1139   : > { %v3090_v47 = vrot.slane %v3089_v46, 2  ;;  %v3086_v48 = vrot.slane %v3085_v45, 1 }
0x113b   : > { %v3091_v49 = vadd.f32 %v3090_v47, %v3089_v46  ;;  %v3087_v51 = vadd.f32 %v3086_v48, %v3085_v45 }
0x113d   : > { %v3092_v50 = vrot.slane %v3091_v49, 1 }
0x113f   : > { %v3093_v52 = vadd.f32 %v3092_v50, %v3091_v49 }
0x1141   : > { %v3099_v53 = vsel %vm3098_vm5, %v3093_v52, %v3087_v51 }
0x1142   : > { %v3102_v54 = vsel %vm3101_vm6, %v3099_v53, 0.0 }
0x1143   : > { %3103 = vadd.xlane.f32.xlu1 %v3102_v54 }
0x11cc   : > { %v3104_v19 = vpop.xlane.xlu1 %3103 }
0x11cd   : > { %v3105_v40 = vmul.f32 0.0078125, %v3104_v19 }
0x11cf   : > { %v3107_v55 = vrot.slane %v3105_v40, 1  ;;  %v3110_v25 = vsub.f32 %v3087_v51, %v3105_v40 }
0x11d1   : > { %v3111_v9 = vsub.f32 %v3093_v52, %v3107_v55  ;;  %v3112_v27 = vmul.f32 %v3110_v25, %v3110_v25 }
0x11d3   : > { %v3113_v56 = vmul.f32 %v3111_v9, %v3111_v9 }
0x11d5   : > { %v3116_v59 = vrot.slane %v3113_v56, 7 }
0x11d7   : > { %v3117_v61 = vsel %vm3098_vm5, %v3116_v59, %v3112_v27 }
0x11d8   : > { %v3119_v22 = vsel %vm3101_vm6, %v3117_v61, 0.0 }
0x11d9   : > { %3120 = vadd.xlane.f32.xlu1 %v3119_v22 }
0x1262   : > { %v3121_v20 = vpop.xlane.xlu1 %3120 }
0x1263   : > { %v3122_v11 = vmul.f32 0.0078125, %v3121_v20 }
0x1265   : > { %v3123_v12 = vadd.f32 1e-05, %v3122_v11 }
0x1267   : > { %4190 = vrsqrt.f32 %v3123_v12 }
0x1274   : > { %v4191_v13 = vpop.eup %4190 }
0x1275   : > { %v3126_v60 = vrot.slane %v4191_v13, 1  ;;  %v3129_v0 = vmul.f32 %v4191_v13, %v3110_v25 }
0x1277   : > { %v3130_v57 = vmul.f32 %v3126_v60, %v3111_v9  ;;  %v3137_v15 = vmul.f32 %v3610_v14, %v3129_v0 }
0x1279   : > { %v3138_v58 = vmul.f32 %v3610_v14, %v3130_v57  ;;  %v3145_v18 = vadd.f32 %v3611_v8, %v3137_v15 }
0x127b   : > { %v3146_v10 = vadd.f32 %v3611_v8, %v3138_v58  ;;  %v3147_v21 = vpack.c.bf16 %v3145_v18, %v3145_v18 }
0x127d   : > { %v3148_v7 = vpack.c.bf16 %v3146_v10, %v3146_v10  ;;  %v3167_v26 = vunpack.c.l.b16 %v3147_v21 }
0x127f   : > { %v3168_v23 = vunpack.c.l.b16 %v3148_v7 }
0x1281   : > { %v3169_v28 = vrot.slane %v3168_v23, 7 }
0x1283   : > { %v3170_v29 = vsel %vm3098_vm5, %v3169_v28, %v3167_v26 }
0x1284   : > { %v3171_v31 = vpack.c.b16 %v3170_v29, %v3170_v29 }
0x1286   : > { %3908 = vmatmul.mubr.bf16.vlgmr.msra.gmra.mxu0 %v3171_v31 }
0x1346   : > { %v3255_v32 = vpop.f32.mrf.mxu0 }
0x1347   : > { %3261 = vst [vmem:[#allocation9] sm:$0x3] %v3255_v32 }
0x1348   : > { %v3909_v30 = vpop.f32.mrf.mxu0 }
0x134a   : > { %v3258_v34 = vpop.f32.mrf.mxu0 }
0x134c   : > { %v3910_v35 = vpop.f32.mrf.mxu0 }
0x134d PF: > { %p3936_p6 = scmp.eq.s32.totalorder %s4473_s28, 1  ;;  %s4363_s23 = smov [#allocation9]  }
0x134e   : > { %s3269_s21 = sshll.u32 %s4363_s23, 4  ;;  %s3270_s21 = int_to_ptr.vmem [resolvable:$true] %s3269_s21 }
0x134f   : > { %s4276_s24 = scalar_lea.vmem %s3270_s21, 32  ;;  %p4283_p12 = scmp.lt.s32.totalorder %s3270_s21, %s3270_s21 }
0x1350   : > { %p4277_p9 = scmp.ne.s32.totalorder %s3270_s21, %s4276_s24  ;;  %p4284_p0 = scmp.lt.s32.totalorder %s4276_s24, %s4276_s24 }
0x1352   : > { %p4278_p11 = pnand %p4277_p9, %p3936_p6  ;;  %p4285_p1 = por %p4284_p0, %p4283_p12 }
0x1354   : > { %p4279_p7 = pneg %p4278_p11 }
0x1356   : > { %p4286_p2 = pnand %p4285_p1, %p4279_p7 }
0x1358   : > { %4289 = shalt.err (!%p4286_p2)
}
0x1359   : > { %s5234_s18 = sld [smem:[#allocation27_spill]] }
0x135f   : > { %3922 = dma.vmem_to_hbm [thread:$0]  (%p3936_p6), %s3270_s21, 32, %s5234_s18, [#allocation5]  }
0x1360   : > { %4325 = dma.done.wait (%p3936_p6), [#allocation5], 32  }
0x1361   : > { %4327 = vsyncadd (%p3936_p6), [#allocation5], 4294967264 }
0x1362 PF: > { %s5235_s27 = sld [smem:[#allocation14_spill]]  ;;  %s5238_s24 = smov %s4334_s25 }
0x1363   : > { %s5236_s17 = sld [smem:[#allocation13_spill]] }
0x1364   : > { %s5237_s26 = sld [smem:[#allocation15_spill]] }
0x1368   : > { %p31_p3 = scmp.ge.s32.totalorder %s5235_s27, 4  }
0x1369   : > { %s5239_s25 = smov %s5236_s17 }
0x136a   :  { %33 = sbr.rel (!%p31_p3) target bundleno = 19 (0x13), region = 184 }
0x136f   :  { %3282 = vsyncpa [#allocation4], 1 }
0x1370   :  { %3284 = vsyncpa [#allocation4 + $0x1], 1 }
0x1371   :  { %3285 = vsyncpa [#allocation7], 1 }
0x1372   :  { %3287 = vsyncpa [#allocation7 + $0x1], 1 }
0x1373   :  { %3288 = vsyncpa [#allocation5], 1 }
0x1374   :  { %3290 = vsyncpa [#allocation5 + $0x1], 1 }

</bundles_post_ra>
